<compile_context>
chip_gen: v7x
topology: tpu7x:2x2x1
jax: 0.10.0
libtpu: 0.0.40
codegen_flags: <defaults>
</compile_context>

<pallas_src>
import jax
import jax.numpy as jnp
from jax.experimental import pallas as pl
from jax.experimental.pallas import tpu as pltpu

_LANE = 128  # TPU lane width; pad all feature dims to a multiple of this.


def _round_up(n, m):
    return ((n + m - 1) // m) * m


def _vnet_kernel(*refs):
    """refs = (x_ref, w1, b1, ..., wL, bL, o_ref).

    x is a (TM, K0) bf16 batch tile; weights are bf16 (K, N) blocks resident
    across all grid steps; biases are (1, N) f32. Accumulation is f32 on the
    MXU; intermediate activations are re-cast to bf16 between layers.
    """
    x_ref = refs[0]
    o_ref = refs[-1]
    wb_refs = refs[1:-1]
    n_layers = len(wb_refs) // 2

    h = x_ref[...]  # bf16 (TM, K0)
    for li in range(n_layers):
        w_ref = wb_refs[2 * li]
        b_ref = wb_refs[2 * li + 1]
        y = jnp.dot(h, w_ref[...], preferred_element_type=jnp.float32) + b_ref[...]
        if li < n_layers - 1:
            h = jnp.maximum(y, 0.0).astype(jnp.bfloat16)
        else:
            o_ref[...] = y  # final layer: no ReLU, f32 output


def init_vnetwork_params(key, in_dim, out_dim, hidden_dim=(256, 64, 256, 64)):
    """Mirrors Critic.init_weights: weight ~ U(-0.1, 0.1), bias = 0.

    Weights are stored transposed as (in, out) so y = x @ W + b matches
    PyTorch's x @ weight.T + bias. Every dim is zero-padded to a multiple of
    128 lanes and the weights are cast to bf16 (f32 accumulation in-kernel).
    """
    initrange = 0.1
    dims = [in_dim] + list(hidden_dim) + [out_dim]
    pdims = [_round_up(d, _LANE) for d in dims]
    layers = []
    for i in range(len(dims) - 1):
        key, sub = jax.random.split(key)
        w = jax.random.uniform(sub, (dims[i], dims[i + 1]),
                               minval=-initrange, maxval=initrange,
                               dtype=jnp.float32)
        w_pad = jnp.zeros((pdims[i], pdims[i + 1]), jnp.float32)
        w_pad = w_pad.at[:dims[i], :dims[i + 1]].set(w)
        b_pad = jnp.zeros((1, pdims[i + 1]), jnp.float32)
        layers.append((w_pad.astype(jnp.bfloat16), b_pad))
    return {
        "layers": layers,
        "in_dim": in_dim,
        "out_dim": out_dim,
        "in_dim_pad": pdims[0],
        "out_dim_pad": pdims[-1],
    }


def vnetwork_forward_batched(states, params, tm=128):
    """Batched MLP: states (B, in_dim) f32 -> (B, out_dim) f32.

    tm: batch tile height. 128 fills the v5e MXU; use 256 on v6e/v7x for
    full array height per vmatmul push.
    """
    B = states.shape[0]
    in_dim = params["in_dim"]
    out_dim = params["out_dim"]
    in_dim_pad = params["in_dim_pad"]
    out_dim_pad = params["out_dim_pad"]

    b_pad = _round_up(max(B, 1), tm)
    x = jnp.zeros((b_pad, in_dim_pad), jnp.float32)
    x = x.at[:B, :in_dim].set(states.astype(jnp.float32))
    x = x.astype(jnp.bfloat16)

    flat_args = [x]
    in_specs = [pl.BlockSpec((tm, in_dim_pad), lambda i: (i, 0))]
    for (w, b) in params["layers"]:
        flat_args.extend([w, b])
        # Constant index_map: weights/biases stay resident in VMEM across the
        # whole batch grid (no per-step re-DMA).
        in_specs.append(pl.BlockSpec(w.shape, lambda i: (0, 0)))
        in_specs.append(pl.BlockSpec(b.shape, lambda i: (0, 0)))

    flops = 2 * b_pad * sum(int(w.shape[0]) * int(w.shape[1])
                            for w, _ in params["layers"])
    bytes_accessed = (sum(w.size * 2 + b.size * 4 for w, b in params["layers"])
                      + b_pad * in_dim_pad * 2 + b_pad * out_dim_pad * 4)

    out = pl.pallas_call(
        _vnet_kernel,
        out_shape=jax.ShapeDtypeStruct((b_pad, out_dim_pad), jnp.float32),
        grid=(b_pad // tm,),
        in_specs=in_specs,
        out_specs=pl.BlockSpec((tm, out_dim_pad), lambda i: (i, 0)),
        compiler_params=pltpu.CompilerParams(
            dimension_semantics=("parallel",)),
        cost_estimate=pl.CostEstimate(flops=flops, transcendentals=0,
                                      bytes_accessed=bytes_accessed),
    )(*flat_args)

    return out[:B, :out_dim]


def vnetwork_forward(state, params, tm=128):
    """Single-state VNetwork.forward semantics: pad a 1-D state with zeros up
    to in_dim (or keep the last in_dim entries), then run the MLP."""
    state = state.astype(jnp.float32)
    in_dim = params["in_dim"]
    n = state.shape[0]
    if n < in_dim:
        state = jnp.concatenate(
            [state, jnp.zeros((in_dim - n,), dtype=jnp.float32)])
    elif n > in_dim:
        state = state[-in_dim:]
    return vnetwork_forward_batched(state.reshape(1, in_dim), params, tm=tm)[0]


def _reference_forward(states, params):
    """Plain-JAX f32 MLP using the same (bf16-stored) weights, for checking."""
    in_dim = params["in_dim"]
    out_dim = params["out_dim"]
    x = jnp.zeros((states.shape[0], params["in_dim_pad"]), jnp.float32)
    x = x.at[:, :in_dim].set(states.astype(jnp.float32))
    h = x
    n_layers = len(params["layers"])
    for li, (w, b) in enumerate(params["layers"]):
        h = h @ w.astype(jnp.float32) + b
        if li < n_layers - 1:
            h = jnp.maximum(h, 0.0)
    return h[:, :out_dim]


if __name__ == "__main__":
    # Small deterministic example: state_dim (in_dim) = 8, out_dim = 4,
    # default hidden dims (256, 64, 256, 64).
    in_dim, out_dim = 8, 4
    hidden_dim = (256, 64, 256, 64)

    key = jax.random.PRNGKey(0)
    key, pkey, skey, bkey = jax.random.split(key, 4)
    params = init_vnetwork_params(pkey, in_dim, out_dim, hidden_dim)

    # Single-state path (exercises the zero-pad branch of VNetwork.forward).
    state = jax.random.normal(skey, (6,), dtype=jnp.float32)
    y = vnetwork_forward(state, params)
    jax.block_until_ready(y)
    assert y.shape == (out_dim,)
    assert y.dtype == jnp.float32

    # Batched path (the performance-relevant one).
    states = jax.random.normal(bkey, (16, in_dim), dtype=jnp.float32)
    yb = vnetwork_forward_batched(states, params)
    jax.block_until_ready(yb)
    assert yb.shape == (16, out_dim)
    assert yb.dtype == jnp.float32

    # Numerical check against a plain-JAX reference (bf16 weights, f32 math).
    yb_ref = _reference_forward(states, params)
    assert jnp.allclose(yb, yb_ref, atol=1e-2, rtol=1e-2)

    state_padded = jnp.concatenate(
        [state, jnp.zeros((in_dim - state.shape[0],), jnp.float32)])
    y_ref = _reference_forward(state_padded.reshape(1, in_dim), params)[0]
    assert jnp.allclose(y, y_ref, atol=1e-2, rtol=1e-2)

    print("KERNEL_OK")
</pallas_src>

<mosaic_0001>
module attributes {stable_mosaic.version = 11 : i64} {
  func.func @_vnet_kernel(%arg0: i32, %arg1: memref<128x128xbf16, #tpu.memory_space<vmem>>, %arg2: memref<128x256xbf16, #tpu.memory_space<vmem>>, %arg3: memref<1x256xf32, #tpu.memory_space<vmem>>, %arg4: memref<256x128xbf16, #tpu.memory_space<vmem>>, %arg5: memref<1x128xf32, #tpu.memory_space<vmem>>, %arg6: memref<128x256xbf16, #tpu.memory_space<vmem>>, %arg7: memref<1x256xf32, #tpu.memory_space<vmem>>, %arg8: memref<256x128xbf16, #tpu.memory_space<vmem>>, %arg9: memref<1x128xf32, #tpu.memory_space<vmem>>, %arg10: memref<128x128xbf16, #tpu.memory_space<vmem>>, %arg11: memref<1x128xf32, #tpu.memory_space<vmem>>, %arg12: memref<128x128xf32, #tpu.memory_space<vmem>>) attributes {dimension_semantics = [#tpu.dimension_semantics<parallel>], iteration_bounds = array<i64: 1>, scalar_prefetch = 0 : i64, scratch_operands = 0 : i64, tpu.core_type = #tpu.core_type<tc>, window_params = [{transform_indices = @transform_0, window_bounds = array<i64: 128, 128>}, {pipeline_mode = #tpu.pipeline_mode<synchronous>, transform_indices = @transform_1, window_bounds = array<i64: 128, 256>}, {pipeline_mode = #tpu.pipeline_mode<synchronous>, transform_indices = @transform_2, window_bounds = array<i64: 1, 256>}, {pipeline_mode = #tpu.pipeline_mode<synchronous>, transform_indices = @transform_3, window_bounds = array<i64: 256, 128>}, {pipeline_mode = #tpu.pipeline_mode<synchronous>, transform_indices = @transform_4, window_bounds = array<i64: 1, 128>}, {pipeline_mode = #tpu.pipeline_mode<synchronous>, transform_indices = @transform_5, window_bounds = array<i64: 128, 256>}, {pipeline_mode = #tpu.pipeline_mode<synchronous>, transform_indices = @transform_6, window_bounds = array<i64: 1, 256>}, {pipeline_mode = #tpu.pipeline_mode<synchronous>, transform_indices = @transform_7, window_bounds = array<i64: 256, 128>}, {pipeline_mode = #tpu.pipeline_mode<synchronous>, transform_indices = @transform_8, window_bounds = array<i64: 1, 128>}, {pipeline_mode = #tpu.pipeline_mode<synchronous>, transform_indices = @transform_9, window_bounds = array<i64: 128, 128>}, {pipeline_mode = #tpu.pipeline_mode<synchronous>, transform_indices = @transform_10, window_bounds = array<i64: 1, 128>}, {transform_indices = @transform_11, window_bounds = array<i64: 128, 128>}]} {
    %c0 = arith.constant 0 : index
    %c0_0 = arith.constant 0 : index
    %0 = vector.load %arg1[%c0, %c0_0] : memref<128x128xbf16, #tpu.memory_space<vmem>>, vector<128x128xbf16>
    %c0_1 = arith.constant 0 : index
    %c0_2 = arith.constant 0 : index
    %1 = vector.load %arg2[%c0_1, %c0_2] : memref<128x256xbf16, #tpu.memory_space<vmem>>, vector<128x256xbf16>
    %cst = arith.constant dense<0.000000e+00> : vector<128x256xf32>
    %2 = tpu.matmul %0, %1, %cst {dimension_numbers = #tpu.dot_dimension_numbers<[1], [0], [0], [1], [0, 0, 1, 1], [], []>} : vector<128x128xbf16>, vector<128x256xbf16>, vector<128x256xf32> -> vector<128x256xf32>
    %c0_3 = arith.constant 0 : index
    %c0_4 = arith.constant 0 : index
    %3 = vector.load %arg3[%c0_3, %c0_4] : memref<1x256xf32, #tpu.memory_space<vmem>>, vector<1x256xf32>
    %4 = vector.broadcast %3 : vector<1x256xf32> to vector<128x256xf32>
    %5 = arith.addf %2, %4 : vector<128x256xf32>
    %cst_5 = arith.constant 0.000000e+00 : f32
    %6 = vector.broadcast %cst_5 : f32 to vector<128x256xf32>
    %7 = arith.maximumf %5, %6 : vector<128x256xf32>
    %8 = arith.truncf %7 : vector<128x256xf32> to vector<128x256xbf16>
    %c0_6 = arith.constant 0 : index
    %c0_7 = arith.constant 0 : index
    %9 = vector.load %arg4[%c0_6, %c0_7] : memref<256x128xbf16, #tpu.memory_space<vmem>>, vector<256x128xbf16>
    %cst_8 = arith.constant dense<0.000000e+00> : vector<128x128xf32>
    %10 = tpu.matmul %8, %9, %cst_8 {dimension_numbers = #tpu.dot_dimension_numbers<[1], [0], [0], [1], [0, 0, 1, 1], [], []>} : vector<128x256xbf16>, vector<256x128xbf16>, vector<128x128xf32> -> vector<128x128xf32>
    %c0_9 = arith.constant 0 : index
    %c0_10 = arith.constant 0 : index
    %11 = vector.load %arg5[%c0_9, %c0_10] : memref<1x128xf32, #tpu.memory_space<vmem>>, vector<1x128xf32>
    %12 = vector.broadcast %11 : vector<1x128xf32> to vector<128x128xf32>
    %13 = arith.addf %10, %12 : vector<128x128xf32>
    %cst_11 = arith.constant 0.000000e+00 : f32
    %14 = vector.broadcast %cst_11 : f32 to vector<128x128xf32>
    %15 = arith.maximumf %13, %14 : vector<128x128xf32>
    %16 = arith.truncf %15 : vector<128x128xf32> to vector<128x128xbf16>
    %c0_12 = arith.constant 0 : index
    %c0_13 = arith.constant 0 : index
    %17 = vector.load %arg6[%c0_12, %c0_13] : memref<128x256xbf16, #tpu.memory_space<vmem>>, vector<128x256xbf16>
    %cst_14 = arith.constant dense<0.000000e+00> : vector<128x256xf32>
    %18 = tpu.matmul %16, %17, %cst_14 {dimension_numbers = #tpu.dot_dimension_numbers<[1], [0], [0], [1], [0, 0, 1, 1], [], []>} : vector<128x128xbf16>, vector<128x256xbf16>, vector<128x256xf32> -> vector<128x256xf32>
    %c0_15 = arith.constant 0 : index
    %c0_16 = arith.constant 0 : index
    %19 = vector.load %arg7[%c0_15, %c0_16] : memref<1x256xf32, #tpu.memory_space<vmem>>, vector<1x256xf32>
    %20 = vector.broadcast %19 : vector<1x256xf32> to vector<128x256xf32>
    %21 = arith.addf %18, %20 : vector<128x256xf32>
    %cst_17 = arith.constant 0.000000e+00 : f32
    %22 = vector.broadcast %cst_17 : f32 to vector<128x256xf32>
    %23 = arith.maximumf %21, %22 : vector<128x256xf32>
    %24 = arith.truncf %23 : vector<128x256xf32> to vector<128x256xbf16>
    %c0_18 = arith.constant 0 : index
    %c0_19 = arith.constant 0 : index
    %25 = vector.load %arg8[%c0_18, %c0_19] : memref<256x128xbf16, #tpu.memory_space<vmem>>, vector<256x128xbf16>
    %cst_20 = arith.constant dense<0.000000e+00> : vector<128x128xf32>
    %26 = tpu.matmul %24, %25, %cst_20 {dimension_numbers = #tpu.dot_dimension_numbers<[1], [0], [0], [1], [0, 0, 1, 1], [], []>} : vector<128x256xbf16>, vector<256x128xbf16>, vector<128x128xf32> -> vector<128x128xf32>
    %c0_21 = arith.constant 0 : index
    %c0_22 = arith.constant 0 : index
    %27 = vector.load %arg9[%c0_21, %c0_22] : memref<1x128xf32, #tpu.memory_space<vmem>>, vector<1x128xf32>
    %28 = vector.broadcast %27 : vector<1x128xf32> to vector<128x128xf32>
    %29 = arith.addf %26, %28 : vector<128x128xf32>
    %cst_23 = arith.constant 0.000000e+00 : f32
    %30 = vector.broadcast %cst_23 : f32 to vector<128x128xf32>
    %31 = arith.maximumf %29, %30 : vector<128x128xf32>
    %32 = arith.truncf %31 : vector<128x128xf32> to vector<128x128xbf16>
    %c0_24 = arith.constant 0 : index
    %c0_25 = arith.constant 0 : index
    %33 = vector.load %arg10[%c0_24, %c0_25] : memref<128x128xbf16, #tpu.memory_space<vmem>>, vector<128x128xbf16>
    %cst_26 = arith.constant dense<0.000000e+00> : vector<128x128xf32>
    %34 = tpu.matmul %32, %33, %cst_26 {dimension_numbers = #tpu.dot_dimension_numbers<[1], [0], [0], [1], [0, 0, 1, 1], [], []>} : vector<128x128xbf16>, vector<128x128xbf16>, vector<128x128xf32> -> vector<128x128xf32>
    %c0_27 = arith.constant 0 : index
    %c0_28 = arith.constant 0 : index
    %35 = vector.load %arg11[%c0_27, %c0_28] : memref<1x128xf32, #tpu.memory_space<vmem>>, vector<1x128xf32>
    %36 = vector.broadcast %35 : vector<1x128xf32> to vector<128x128xf32>
    %37 = arith.addf %34, %36 : vector<128x128xf32>
    %c0_29 = arith.constant 0 : index
    %c0_30 = arith.constant 0 : index
    %38 = vector.load %arg12[%c0_29, %c0_30] : memref<128x128xf32, #tpu.memory_space<vmem>>, vector<128x128xf32>
    tpu.vector_store %arg12[%c0_29, %c0_30], %37 {strides = array<i32>} : memref<128x128xf32, #tpu.memory_space<vmem>>, vector<128x128xf32>,
    return
  }
  func.func @transform_0(%arg0: i32) -> (i32, i32) {
    %c0_i32 = arith.constant 0 : i32
    %c0_i32_0 = arith.constant 0 : i32
    return %arg0, %c0_i32 : i32, i32
  }
  func.func @transform_1(%arg0: i32) -> (i32, i32) {
    %c0_i32 = arith.constant 0 : i32
    %c0_i32_0 = arith.constant 0 : i32
    %c0_i32_1 = arith.constant 0 : i32
    return %c0_i32, %c0_i32_0 : i32, i32
  }
  func.func @transform_2(%arg0: i32) -> (i32, i32) {
    %c0_i32 = arith.constant 0 : i32
    %c0_i32_0 = arith.constant 0 : i32
    %c0_i32_1 = arith.constant 0 : i32
    return %c0_i32, %c0_i32_0 : i32, i32
  }
  func.func @transform_3(%arg0: i32) -> (i32, i32) {
    %c0_i32 = arith.constant 0 : i32
    %c0_i32_0 = arith.constant 0 : i32
    %c0_i32_1 = arith.constant 0 : i32
    return %c0_i32, %c0_i32_0 : i32, i32
  }
  func.func @transform_4(%arg0: i32) -> (i32, i32) {
    %c0_i32 = arith.constant 0 : i32
    %c0_i32_0 = arith.constant 0 : i32
    %c0_i32_1 = arith.constant 0 : i32
    return %c0_i32, %c0_i32_0 : i32, i32
  }
  func.func @transform_5(%arg0: i32) -> (i32, i32) {
    %c0_i32 = arith.constant 0 : i32
    %c0_i32_0 = arith.constant 0 : i32
    %c0_i32_1 = arith.constant 0 : i32
    return %c0_i32, %c0_i32_0 : i32, i32
  }
  func.func @transform_6(%arg0: i32) -> (i32, i32) {
    %c0_i32 = arith.constant 0 : i32
    %c0_i32_0 = arith.constant 0 : i32
    %c0_i32_1 = arith.constant 0 : i32
    return %c0_i32, %c0_i32_0 : i32, i32
  }
  func.func @transform_7(%arg0: i32) -> (i32, i32) {
    %c0_i32 = arith.constant 0 : i32
    %c0_i32_0 = arith.constant 0 : i32
    %c0_i32_1 = arith.constant 0 : i32
    return %c0_i32, %c0_i32_0 : i32, i32
  }
  func.func @transform_8(%arg0: i32) -> (i32, i32) {
    %c0_i32 = arith.constant 0 : i32
    %c0_i32_0 = arith.constant 0 : i32
    %c0_i32_1 = arith.constant 0 : i32
    return %c0_i32, %c0_i32_0 : i32, i32
  }
  func.func @transform_9(%arg0: i32) -> (i32, i32) {
    %c0_i32 = arith.constant 0 : i32
    %c0_i32_0 = arith.constant 0 : i32
    %c0_i32_1 = arith.constant 0 : i32
    return %c0_i32, %c0_i32_0 : i32, i32
  }
  func.func @transform_10(%arg0: i32) -> (i32, i32) {
    %c0_i32 = arith.constant 0 : i32
    %c0_i32_0 = arith.constant 0 : i32
    %c0_i32_1 = arith.constant 0 : i32
    return %c0_i32, %c0_i32_0 : i32, i32
  }
  func.func @transform_11(%arg0: i32) -> (i32, i32) {
    %c0_i32 = arith.constant 0 : i32
    %c0_i32_0 = arith.constant 0 : i32
    return %arg0, %c0_i32 : i32, i32
  }
}

</mosaic_0001>

<bundles_post_ra>
// kernel: tpu_custom_call.1
= control target key start
LH: loop header
LB: loop body
LE: loop exit
PB: predicated region body
PF: predicated region fallthrough
CT: control target
= control target key end

     0   :  { %16 = vsyncpa [#allocation3], 0  ;;  %s2315_s0 = inlined_call_operand.hbm [shape: bf16[128,128], index: 0, kind: input, shape index: {}]   ;;  %s2316_s1 = inlined_call_operand.hbm [shape: bf16[128,256], index: 1, kind: input, shape index: {}]   ;;  %s2317_s2 = inlined_call_operand.vmem [shape: f32[1,256], index: 2, kind: input, shape index: {}]   ;;  %s2318_s3 = inlined_call_operand.hbm [shape: bf16[256,128], index: 3, kind: input, shape index: {}]   ;;  %s2319_s4 = inlined_call_operand.vmem [shape: f32[1,128], index: 4, kind: input, shape index: {}]   ;;  %s2320_s5 = inlined_call_operand.hbm [shape: bf16[128,256], index: 5, kind: input, shape index: {}]   ;;  %s2321_s6 = inlined_call_operand.vmem [shape: f32[1,256], index: 6, kind: input, shape index: {}]   ;;  %s2322_s7 = inlined_call_operand.hbm [shape: bf16[256,128], index: 7, kind: input, shape index: {}]   ;;  %s2323_s8 = inlined_call_operand.vmem [shape: f32[1,128], index: 8, kind: input, shape index: {}]   ;;  %s2324_s9 = inlined_call_operand.hbm [shape: bf16[128,128], index: 9, kind: input, shape index: {}]   ;;  %s2325_s10 = inlined_call_operand.vmem [shape: f32[1,128], index: 10, kind: input, shape index: {}]   ;;  %s2326_s11 = inlined_call_operand.hbm [shape: f32[128,128], index: 11, kind: output, shape index: {}]  }
   0x1   :  { %17 = vsyncpa [#allocation6], 0 }
   0x2   :  { %18 = vsyncpa [#allocation9], 0 }
   0x3   :  { %19 = vsyncpa [#allocation12], 0 }
   0x4   :  { %20 = vsyncpa [#allocation4], 0  ;;  %s1987_s17 = smov [#allocation5]   ;;  %s1823_s21 = scalar_lea.hbm %s2316_s1, 2048 }
   0x5   :  { %s38_s18 = sshll.u32 %s1987_s17, 4  ;;  %p1824_p0 = scmp.ne.s32.totalorder %s2316_s1, %s1823_s21  ;;  %s39_s18 = int_to_ptr.vmem [resolvable:$true] %s38_s18 }
   0x6   :  { %p1827_p1 = scmp.lt.u32.totalorder %s1823_s21, %s2316_s1 }
   0x8   :  { %p1829_p2 = pnand %p1827_p1, %p1824_p0 }
   0xa   :  { %1832 = shalt.err (!%p1829_p2)
}
   0xb   :  { %s1833_s26 = scalar_lea.vmem %s39_s18, 2048  ;;  %p1838_p4 = scmp.lt.s32.totalorder %s39_s18, %s39_s18 }
   0xc   :  { %p1834_p3 = scmp.ne.s32.totalorder %s39_s18, %s1833_s26  ;;  %p1839_p5 = scmp.lt.s32.totalorder %s1833_s26, %s1833_s26 }
   0xe   :  { %p1840_p6 = por %p1839_p5, %p1838_p4 }
  0x10   :  { %p1841_p7 = pnand %p1840_p6, %p1834_p3 }
  0x12   :  { %1844 = shalt.err (!%p1841_p7)
}
  0x13   :  { %s1988_s27 = smov 128   ;;  %s1989_s28 = smov 8  }
  0x14   :  { %44 = dma.hbm_to_vmem [thread:$0]  %s2316_s1, 2048, %s39_s18, [#allocation6], %s1988_s27, %s1988_s27, %s1989_s28  }
  0x15   :  { %s1990_s12 = smov [#allocation8]   ;;  %s1991_s14 = smov [#allocation2]  }
  0x16   :  { %s66_s13 = sshll.u32 %s1990_s12, 4  ;;  %s26_s15 = sshll.u32 %s1991_s14, 4  ;;  %s67_s13 = int_to_ptr.vmem [resolvable:$true] %s66_s13  ;;  %s27_s15 = int_to_ptr.vmem [resolvable:$true] %s26_s15 }
  0x17   :  { %s1845_s19 = scalar_lea.hbm %s2320_s5, 2048 }
  0x18   :  { %p1846_p8 = scmp.ne.s32.totalorder %s2320_s5, %s1845_s19  ;;  %p1849_p9 = scmp.lt.u32.totalorder %s1845_s19, %s2320_s5 }
  0x1a   :  { %p1851_p10 = pnand %p1849_p9, %p1846_p8 }
  0x1c   :  { %1854 = shalt.err (!%p1851_p10)
}
  0x1d   :  { %s1855_s1 = scalar_lea.vmem %s67_s13, 2048  ;;  %p1860_p12 = scmp.lt.s32.totalorder %s67_s13, %s67_s13 }
  0x1e   :  { %p1856_p11 = scmp.ne.s32.totalorder %s67_s13, %s1855_s1  ;;  %p1861_p13 = scmp.lt.s32.totalorder %s1855_s1, %s1855_s1 }
  0x20   :  { %p1862_p0 = por %p1861_p13, %p1860_p12 }
  0x22   :  { %p1863_p1 = pnand %p1862_p0, %p1856_p11 }
  0x24   :  { %1866 = shalt.err (!%p1863_p1)
}
  0x25   :  { %72 = dma.hbm_to_vmem [thread:$0]  %s2320_s5, 2048, %s67_s13, [#allocation9], %s1988_s27, %s1988_s27, %s1989_s28  }
  0x26   :  { %s1867_s29 = scalar_lea.hbm %s2315_s0, 1024 }
  0x27   :  { %p1868_p2 = scmp.ne.s32.totalorder %s2315_s0, %s1867_s29  ;;  %p1871_p3 = scmp.lt.u32.totalorder %s1867_s29, %s2315_s0 }
  0x29   :  { %p1873_p4 = pnand %p1871_p3, %p1868_p2 }
  0x2b   :  { %1876 = shalt.err (!%p1873_p4)
}
  0x2c   :  { %s1877_s17 = scalar_lea.vmem %s27_s15, 1024  ;;  %p1882_p6 = scmp.lt.s32.totalorder %s27_s15, %s27_s15 }
  0x2d   :  { %p1878_p5 = scmp.ne.s32.totalorder %s27_s15, %s1877_s17  ;;  %p1883_p7 = scmp.lt.s32.totalorder %s1877_s17, %s1877_s17 }
  0x2f   :  { %p1884_p8 = por %p1883_p7, %p1882_p6 }
  0x31   :  { %p1885_p9 = pnand %p1884_p8, %p1878_p5 }
  0x33   :  { %1888 = shalt.err (!%p1885_p9)
}
  0x34   :  { %s1992_s5 = smov 64   ;;  %s1993_s13 = smov 4  }
  0x35   :  { %32 = dma.hbm_to_vmem [thread:$0]  %s2315_s0, 1024, %s27_s15, [#allocation3], %s1992_s5, %s1992_s5, %s1993_s13  }
  0x36   :  { %s1994_s21 = smov [#allocation7]   ;;  %s1995_s23 = smov [#allocation10]  }
  0x37   :  { %s52_s22 = sshll.u32 %s1994_s21, 4  ;;  %s80_s1 = sshll.u32 %s1995_s23, 4  ;;  %s53_s22 = int_to_ptr.vmem [resolvable:$true] %s52_s22  ;;  %s81_s1 = int_to_ptr.vmem [resolvable:$true] %s80_s1 }
  0x38   :  { %s1889_s25 = scalar_lea.hbm %s2318_s3, 2048 }
  0x39   :  { %p1890_p10 = scmp.ne.s32.totalorder %s2318_s3, %s1889_s25  ;;  %p1893_p11 = scmp.lt.u32.totalorder %s1889_s25, %s2318_s3 }
  0x3b   :  { %p1895_p12 = pnand %p1893_p11, %p1890_p10 }
  0x3d   :  { %1898 = shalt.err (!%p1895_p12)
}
  0x3e   :  { %s1899_s0 = scalar_lea.vmem %s53_s22, 2048  ;;  %p1904_p0 = scmp.lt.s32.totalorder %s53_s22, %s53_s22 }
  0x3f   :  { %p1900_p13 = scmp.ne.s32.totalorder %s53_s22, %s1899_s0  ;;  %p1905_p1 = scmp.lt.s32.totalorder %s1899_s0, %s1899_s0 }
  0x41   :  { %p1906_p2 = por %p1905_p1, %p1904_p0 }
  0x43   :  { %p1907_p3 = pnand %p1906_p2, %p1900_p13 }
  0x45   :  { %1910 = shalt.err (!%p1907_p3)
}
  0x46   :  { %58 = dma.hbm_to_vmem [thread:$0]  %s2318_s3, 2048, %s53_s22, [#allocation6], %s1992_s5, %s1992_s5, %s1993_s13  }
  0x47   :  { %s1911_s19 = scalar_lea.hbm %s2322_s7, 2048 }
  0x48   :  { %p1912_p4 = scmp.ne.s32.totalorder %s2322_s7, %s1911_s19  ;;  %p1915_p5 = scmp.lt.u32.totalorder %s1911_s19, %s2322_s7 }
  0x4a   :  { %p1917_p6 = pnand %p1915_p5, %p1912_p4 }
  0x4c   :  { %1920 = shalt.err (!%p1917_p6)
}
  0x4d   :  { %s1921_s24 = scalar_lea.vmem %s81_s1, 2048  ;;  %p1926_p8 = scmp.lt.s32.totalorder %s81_s1, %s81_s1 }
  0x4e   :  { %p1922_p7 = scmp.ne.s32.totalorder %s81_s1, %s1921_s24  ;;  %p1927_p9 = scmp.lt.s32.totalorder %s1921_s24, %s1921_s24 }
  0x50   :  { %p1928_p10 = por %p1927_p9, %p1926_p8 }
  0x52   :  { %p1929_p11 = pnand %p1928_p10, %p1922_p7 }
  0x54   :  { %1932 = shalt.err (!%p1929_p11)
}
  0x55   :  { %86 = dma.hbm_to_vmem [thread:$0]  %s2322_s7, 2048, %s81_s1, [#allocation9], %s1992_s5, %s1992_s5, %s1993_s13  }
  0x56   :  { %s1996_s25 = smov [#allocation11]   ;;  %s1933_s12 = scalar_lea.hbm %s2324_s9, 1024 }
  0x57   :  { %s94_s26 = sshll.u32 %s1996_s25, 4  ;;  %p1934_p12 = scmp.ne.s32.totalorder %s2324_s9, %s1933_s12  ;;  %s95_s26 = int_to_ptr.vmem [resolvable:$true] %s94_s26 }
  0x58   :  { %p1937_p13 = scmp.lt.u32.totalorder %s1933_s12, %s2324_s9 }
  0x5a   :  { %p1939_p0 = pnand %p1937_p13, %p1934_p12 }
  0x5c   :  { %1942 = shalt.err (!%p1939_p0)
}
  0x5d   :  { %s1943_s17 = scalar_lea.vmem %s95_s26, 1024  ;;  %p1948_p2 = scmp.lt.s32.totalorder %s95_s26, %s95_s26 }
  0x5e   :  { %p1944_p1 = scmp.ne.s32.totalorder %s95_s26, %s1943_s17  ;;  %p1949_p3 = scmp.lt.s32.totalorder %s1943_s17, %s1943_s17 }
  0x60   :  { %p1950_p4 = por %p1949_p3, %p1948_p2 }
  0x62   :  { %p1951_p5 = pnand %p1950_p4, %p1944_p1 }
  0x64   :  { %1954 = shalt.err (!%p1951_p5)
}
  0x65   :  { %100 = dma.hbm_to_vmem [thread:$0]  %s2324_s9, 1024, %s95_s26, [#allocation12], %s1992_s5, %s1992_s5, %s1993_s13  }
  0x66   :  { %1977 = dma.done.wait [#allocation3], 1024  }
  0x67   :  { %1978 = vsyncadd [#allocation3], 4294966272 }
  0x68   :  { %1979 = dma.done.wait [#allocation6], 4096  }
  0x69   :  { %1980 = vsyncadd [#allocation6], 4294963200 }
  0x6a   :  { %1981 = dma.done.wait [#allocation9], 4096  }
  0x6b   :  { %1982 = vsyncadd [#allocation9], 4294963200 }
  0x6c   :  { %1983 = dma.done.wait [#allocation12], 1024  }
  0x6d   :  { %1984 = vsyncadd [#allocation12], 4294966272  ;;  %v1997_v0 = vmov 0   ;;  %v1727_v1 = vld [vmem:[#allocation5 + $0x4] ss:$8 sps:$4 sm:$0xff]   ;;  %v1763_v19 = vld [vmem:[#allocation7 + $0x50] sm:$0xff]   ;;  %v156_v55 = vlaneseq }
  0x6e   :  { %326 = vmatprep.mubr.bf16.mxu0 %v1997_v0  ;;  %v1729_v2 = vld [vmem:[#allocation5] ss:$8 sps:$4 sm:$0xff]   ;;  %294 = vmatprep.subr.bf16.mxu0 %v1727_v1  ;;  %v1730_v3 = vld [vmem:[#allocation5 + $0x14] ss:$8 sps:$4 sm:$0xff]   ;;  %v1732_v4 = vld [vmem:[#allocation5 + $0x10] ss:$8 sps:$4 sm:$0xff]  }
  0x6f   :  { %295 = vmatpush1.bf16.msra.mxu0 %v1729_v2  ;;  %v1733_v5 = vld [vmem:[#allocation5 + $0x24] ss:$8 sps:$4 sm:$0xff]   ;;  %v1735_v6 = vld [vmem:[#allocation5 + $0x20] ss:$8 sps:$4 sm:$0xff]   ;;  %v1736_v7 = vld [vmem:[#allocation5 + $0x34] ss:$8 sps:$4 sm:$0xff]  }
  0x70   :  { %296 = vmatprep.subr.bf16.mxu0 %v1730_v3  ;;  %v1738_v8 = vld [vmem:[#allocation5 + $0x30] ss:$8 sps:$4 sm:$0xff]   ;;  %v1739_v9 = vld [vmem:[#allocation5 + $0x44] ss:$8 sps:$4 sm:$0xff]   ;;  %v1741_v10 = vld [vmem:[#allocation5 + $0x40] ss:$8 sps:$4 sm:$0xff]  }
  0x71   :  { %v1742_v11 = vld [vmem:[#allocation5 + $0x54] ss:$8 sps:$4 sm:$0xff]   ;;  %v1744_v12 = vld [vmem:[#allocation5 + $0x50] ss:$8 sps:$4 sm:$0xff]   ;;  %v1745_v13 = vld [vmem:[#allocation5 + $0x64] ss:$8 sps:$4 sm:$0xff]  }
  0x72   :  { %v1759_v14 = vld [vmem:[#allocation7 + $0x40] sm:$0xff]   ;;  %v1761_v17 = vld [vmem:[#allocation7 + $0x48] sm:$0xff]   ;;  %v1748_v20 = vld [vmem:[#allocation5 + $0x74] ss:$8 sps:$4 sm:$0xff]   ;;  %v2158_v56 = vshrl.u32 %v156_v55, 7 }
  0x73   :  { %297 = vmatpush1.bf16.msra.mxu0 %v1732_v4  ;;  %v1760_v15 = vld [vmem:[#allocation7] sm:$0xff]   ;;  %1523 = vmatprep.subr.bf16.mxu1 %v1759_v14  ;;  %v1762_v18 = vld [vmem:[#allocation7 + $0x8] sm:$0xff]   ;;  %v1750_v21 = vld [vmem:[#allocation5 + $0x70] ss:$8 sps:$4 sm:$0xff]  }
  0x74   :  { %298 = vmatprep.subr.bf16.mxu0 %v1733_v5  ;;  %v1747_v16 = vld [vmem:[#allocation5 + $0x60] ss:$8 sps:$4 sm:$0xff]   ;;  %1524 = vmatpush3.bf16.msra.mxu1 %v1760_v15  ;;  %v1764_v22 = vld [vmem:[#allocation7 + $0x10] sm:$0xff]   ;;  %v1765_v23 = vld [vmem:[#allocation7 + $0x58] sm:$0xff]   ;;  %v158_v57 = vsub.s32 0, %v2158_v56  ;;  %v162_v59 = vsub.s32 1, %v2158_v56 }
  0x75   :  { %1525 = vmatprep.subr.bf16.mxu1 %v1761_v17  ;;  %v1751_v24 = vld [vmem:[#allocation2] sm:$0xff]   ;;  %v1766_v25 = vld [vmem:[#allocation7 + $0x18] sm:$0xff]   ;;  %v1769_v28 = vld [vmem:[#allocation7 + $0x68] sm:$0xff]  }
  0x76   :  { %v1767_v26 = vld [vmem:[#allocation7 + $0x60] sm:$0xff]   ;;  %v1752_v29 = vld [vmem:[#allocation2 + $0x8] sm:$0xff]   ;;  %v1753_v30 = vld [vmem:[#allocation2 + $0x10] sm:$0xff]  }
  0x77   :  { %299 = vmatpush1.bf16.msra.mxu0 %v1735_v6  ;;  %v1768_v27 = vld [vmem:[#allocation7 + $0x20] sm:$0xff]   ;;  %v1754_v31 = vld [vmem:[#allocation2 + $0x18] sm:$0xff]   ;;  %v1756_v33 = vld [vmem:[#allocation2 + $0x28] sm:$0xff]  }
  0x78   :  { %300 = vmatprep.subr.bf16.mxu0 %v1736_v7  ;;  %1526 = vmatpush3.bf16.msra.mxu1 %v1762_v18  ;;  %v1755_v32 = vld [vmem:[#allocation2 + $0x20] sm:$0xff]   ;;  %v1757_v34 = vld [vmem:[#allocation2 + $0x30] sm:$0xff]   ;;  %v1758_v35 = vld [vmem:[#allocation2 + $0x38] sm:$0xff]  }
  0x79   :  { %1527 = vmatprep.subr.bf16.mxu1 %v1763_v19  ;;  %v1770_v36 = vld [vmem:[#allocation7 + $0x28] sm:$0xff]   ;;  %v1771_v37 = vld [vmem:[#allocation7 + $0x70] sm:$0xff]   ;;  %v1773_v39 = vld [vmem:[#allocation7 + $0x78] sm:$0xff]  }
  0x7a   :  { %v1772_v38 = vld [vmem:[#allocation7 + $0x30] sm:$0xff]   ;;  %v1774_v40 = vld [vmem:[#allocation7 + $0x38] sm:$0xff]   ;;  %v1775_v41 = vld [vmem:[#allocation8] ss:$8 sps:$4 sm:$0xff]  }
  0x7b   :  { %301 = vmatpush1.bf16.msra.mxu0 %v1738_v8  ;;  %v1777_v42 = vld [vmem:[#allocation8 + $0x4] ss:$8 sps:$4 sm:$0xff]   ;;  %v1780_v43 = vld [vmem:[#allocation8 + $0x14] ss:$8 sps:$4 sm:$0xff]   ;;  %v1778_v44 = vld [vmem:[#allocation8 + $0x10] ss:$8 sps:$4 sm:$0xff]  }
  0x7c   :  { %302 = vmatprep.subr.bf16.mxu0 %v1739_v9  ;;  %1528 = vmatpush3.bf16.msra.mxu1 %v1764_v22  ;;  %v1783_v45 = vld [vmem:[#allocation8 + $0x24] ss:$8 sps:$4 sm:$0xff]   ;;  %v1781_v46 = vld [vmem:[#allocation8 + $0x20] ss:$8 sps:$4 sm:$0xff]   ;;  %v1786_v47 = vld [vmem:[#allocation8 + $0x34] ss:$8 sps:$4 sm:$0xff]  }
  0x7d   :  { %1529 = vmatprep.subr.bf16.mxu1 %v1765_v23  ;;  %v1784_v48 = vld [vmem:[#allocation8 + $0x30] ss:$8 sps:$4 sm:$0xff]   ;;  %v1789_v49 = vld [vmem:[#allocation8 + $0x44] ss:$8 sps:$4 sm:$0xff]   ;;  %v1787_v50 = vld [vmem:[#allocation8 + $0x40] ss:$8 sps:$4 sm:$0xff]  }
  0x7e   :  { %v1792_v51 = vld [vmem:[#allocation8 + $0x54] ss:$8 sps:$4 sm:$0xff]   ;;  %v1790_v52 = vld [vmem:[#allocation8 + $0x50] ss:$8 sps:$4 sm:$0xff]   ;;  %v1795_v53 = vld [vmem:[#allocation8 + $0x64] ss:$8 sps:$4 sm:$0xff]  }
  0x7f   :  { %303 = vmatpush1.bf16.msra.mxu0 %v1741_v10  ;;  %v1793_v54 = vld [vmem:[#allocation8 + $0x60] ss:$8 sps:$4 sm:$0xff]  }
  0x80   :  { %304 = vmatprep.subr.bf16.mxu0 %v1742_v11  ;;  %1530 = vmatpush3.bf16.msra.mxu1 %v1766_v25  ;;  %v154_v58 = vld [vmem:[%s2317_s2] sm:$0x3] }
  0x81   :  { %1531 = vmatprep.subr.bf16.mxu1 %v1767_v26  ;;  %v2167_v60 = vrot.slane %v154_v58, %v158_v57  ;;  %v2171_v61 = vrot.slane %v154_v58, %v162_v59 }
  0x83   :  { %305 = vmatpush1.bf16.msra.mxu0 %v1744_v12 }
  0x84   :  { %306 = vmatprep.subr.bf16.mxu0 %v1745_v13  ;;  %1532 = vmatpush3.bf16.msra.mxu1 %v1768_v27 }
  0x85   :  { %1533 = vmatprep.subr.bf16.mxu1 %v1769_v28 }
  0x87   :  { %307 = vmatpush1.bf16.msra.mxu0 %v1747_v16 }
  0x88   :  { %308 = vmatprep.subr.bf16.mxu0 %v1748_v20  ;;  %1534 = vmatpush3.bf16.msra.mxu1 %v1770_v36 }
  0x89   :  { %1535 = vmatprep.subr.bf16.mxu1 %v1771_v37 }
  0x8b   :  { %309 = vmatpush1.bf16.msra.mxu0 %v1750_v21 }
  0x8c   :  { %1536 = vmatpush3.bf16.msra.mxu1 %v1772_v38  ;;  %819 = vmatprep.subr.bf16.mxu0 %v1777_v42 }
  0x8d   :  { %1537 = vmatprep.subr.bf16.mxu1 %v1773_v39 }
  0x8e   :  { %327 = vmatmul.mubr.bf16.vlgmr.msra.gmra.mrb[0].mxu0 %v1751_v24 }
  0x8f   :  { %336 = vmatprep.mubr.bf16.mxu0 %v1997_v0  ;;  %820 = vmatpush1.bf16.msra.mxu0 %v1775_v41 }
  0x90   :  { %1538 = vmatpush3.bf16.msra.mxu1 %v1774_v40  ;;  %821 = vmatprep.subr.bf16.mxu0 %v1780_v43 }
  0x93   :  { %822 = vmatpush1.bf16.msra.mxu0 %v1778_v44 }
  0x94   :  { %823 = vmatprep.subr.bf16.mxu0 %v1783_v45 }
  0x96   :  { %337 = vmatmul.mubr.bf16.gmra.mrb[4].mxu0 %v1752_v29 }
  0x97   :  { %346 = vmatprep.mubr.bf16.mxu0 %v1997_v0  ;;  %824 = vmatpush1.bf16.msra.mxu0 %v1781_v46 }
  0x98   :  { %825 = vmatprep.subr.bf16.mxu0 %v1786_v47 }
  0x9b   :  { %826 = vmatpush1.bf16.msra.mxu0 %v1784_v48 }
  0x9c   :  { %827 = vmatprep.subr.bf16.mxu0 %v1789_v49 }
  0x9e   :  { %347 = vmatmul.mubr.bf16.gmra.mrb[8].mxu0 %v1753_v30 }
  0x9f   :  { %356 = vmatprep.mubr.bf16.mxu0 %v1997_v0  ;;  %828 = vmatpush1.bf16.msra.mxu0 %v1787_v50 }
  0xa0   :  { %829 = vmatprep.subr.bf16.mxu0 %v1792_v51 }
  0xa3   :  { %830 = vmatpush1.bf16.msra.mxu0 %v1790_v52 }
  0xa4   :  { %831 = vmatprep.subr.bf16.mxu0 %v1795_v53 }
  0xa6   :  { %357 = vmatmul.mubr.bf16.gmra.mrb[12].mxu0 %v1754_v31 }
  0xa7   :  { %366 = vmatprep.mubr.bf16.mxu0 %v1997_v0  ;;  %832 = vmatpush1.bf16.msra.mxu0 %v1793_v54 }
  0xae   :  { %367 = vmatmul.mubr.bf16.gmra.mrb[16].mxu0 %v1755_v32 }
  0xaf   :  { %376 = vmatprep.mubr.bf16.mxu0 %v1997_v0 }
  0xb6   :  { %377 = vmatmul.mubr.bf16.gmra.mrb[20].mxu0 %v1756_v33 }
  0xb7   :  { %386 = vmatprep.mubr.bf16.mxu0 %v1997_v0 }
  0xbe   :  { %387 = vmatmul.mubr.bf16.gmra.mrb[24].mxu0 %v1757_v34 }
  0xbf   :  { %396 = vmatprep.mubr.bf16.mxu0 %v1997_v0 }
  0xc6   :  { %397 = vmatmul.mubr.bf16.gmra.mrb[28].mxu0 %v1758_v35 }
  0xc7   :  { %851 = vmatprep.mubr.bf16.mxu0 %v1997_v0 }
 0x161   :  { %v328_v62 = vpop.f32.mrb[0].mxu0 }
 0x162   :  { %v329_v63 = vadd.f32 %v328_v62, %v2167_v60  ;;  %v330_v1 = vpop.f32.mrb[1].mxu0 }
 0x163   :  { %v331_v2 = vadd.f32 %v330_v1, %v2171_v61  ;;  %v332_v3 = vpop.f32.mrb[2].mxu0 }
 0x164   :  { %v333_v4 = vadd.f32 %v332_v3, %v2167_v60  ;;  %v334_v5 = vpop.f32.mrb[3].mxu0  ;;  %v407_v7 = vmax.f32 %v329_v63, 0.0 }
 0x165   :  { %v335_v6 = vadd.f32 %v334_v5, %v2171_v61  ;;  %v408_v9 = vmax.f32 %v331_v2, 0.0 }
 0x166   :  { %v409_v8 = vmax.f32 %v333_v4, 0.0 }
 0x167   :  { %v410_v10 = vmax.f32 %v335_v6, 0.0 }
 0x168   :  { %v439_v11 = vpack.c.bf16 %v409_v8, %v407_v7 }
 0x169   :  { %v338_v12 = vpop.f32.mrb[4].mxu0  ;;  %v440_v13 = vpack.c.bf16 %v410_v10, %v408_v9 }
 0x16a   :  { %v339_v14 = vadd.f32 %v338_v12, %v2167_v60  ;;  %v340_v15 = vpop.f32.mrb[5].mxu0 }
 0x16b   :  { %v341_v16 = vadd.f32 %v340_v15, %v2171_v61  ;;  %v342_v17 = vpop.f32.mrb[6].mxu0  ;;  %622 = vmatprep.mubr.bf16.mxu1 %v440_v13 }
 0x16c   :  { %v343_v18 = vadd.f32 %v342_v17, %v2167_v60  ;;  %v344_v19 = vpop.f32.mrb[7].mxu0  ;;  %623 = vmatmul.mubr.bf16.vlgmr.msra.gmra.mrb[0].mxu1 %v439_v11  ;;  %v411_v21 = vmax.f32 %v339_v14, 0.0 }
 0x16d   :  { %v345_v20 = vadd.f32 %v344_v19, %v2171_v61  ;;  %v412_v23 = vmax.f32 %v341_v16, 0.0 }
 0x16e   :  { %v413_v22 = vmax.f32 %v343_v18, 0.0 }
 0x16f   :  { %v414_v24 = vmax.f32 %v345_v20, 0.0 }
 0x170   :  { %v441_v25 = vpack.c.bf16 %v413_v22, %v411_v21 }
 0x171   :  { %v442_v26 = vpack.c.bf16 %v414_v24, %v412_v23  ;;  %v348_v27 = vpop.f32.mrb[8].mxu0 }
 0x172   :  { %v349_v28 = vadd.f32 %v348_v27, %v2167_v60  ;;  %v350_v29 = vpop.f32.mrb[9].mxu0 }
 0x173   :  { %v351_v30 = vadd.f32 %v350_v29, %v2171_v61  ;;  %v352_v31 = vpop.f32.mrb[10].mxu0  ;;  %630 = vmatprep.mubr.bf16.mxu1 %v442_v26 }
 0x174   :  { %v353_v32 = vadd.f32 %v352_v31, %v2167_v60  ;;  %v354_v33 = vpop.f32.mrb[11].mxu0  ;;  %631 = vmatmul.mubr.bf16.gmra.mrb[4].mxu1 %v441_v25  ;;  %v415_v35 = vmax.f32 %v349_v28, 0.0 }
 0x175   :  { %v355_v34 = vadd.f32 %v354_v33, %v2171_v61  ;;  %v416_v37 = vmax.f32 %v351_v30, 0.0 }
 0x176   :  { %v417_v36 = vmax.f32 %v353_v32, 0.0 }
 0x177   :  { %v418_v38 = vmax.f32 %v355_v34, 0.0 }
 0x178   :  { %v443_v39 = vpack.c.bf16 %v417_v36, %v415_v35 }
 0x179   :  { %v444_v40 = vpack.c.bf16 %v418_v38, %v416_v37  ;;  %v358_v41 = vpop.f32.mrb[12].mxu0 }
 0x17a   :  { %v359_v42 = vadd.f32 %v358_v41, %v2167_v60  ;;  %v360_v43 = vpop.f32.mrb[13].mxu0 }
 0x17b   :  { %v361_v44 = vadd.f32 %v360_v43, %v2171_v61  ;;  %v362_v45 = vpop.f32.mrb[14].mxu0  ;;  %638 = vmatprep.mubr.bf16.mxu1 %v444_v40 }
 0x17c   :  { %v363_v46 = vadd.f32 %v362_v45, %v2167_v60  ;;  %v364_v47 = vpop.f32.mrb[15].mxu0  ;;  %639 = vmatmul.mubr.bf16.gmra.mrb[8].mxu1 %v443_v39  ;;  %v419_v49 = vmax.f32 %v359_v42, 0.0 }
 0x17d   :  { %v365_v48 = vadd.f32 %v364_v47, %v2171_v61  ;;  %v420_v51 = vmax.f32 %v361_v44, 0.0 }
 0x17e   :  { %v421_v50 = vmax.f32 %v363_v46, 0.0 }
 0x17f   :  { %v422_v52 = vmax.f32 %v365_v48, 0.0 }
 0x180   :  { %v445_v53 = vpack.c.bf16 %v421_v50, %v419_v49 }
 0x181   :  { %v446_v54 = vpack.c.bf16 %v422_v52, %v420_v51  ;;  %v368_v55 = vpop.f32.mrb[16].mxu0 }
 0x182   :  { %v369_v58 = vadd.f32 %v368_v55, %v2167_v60  ;;  %v370_v62 = vpop.f32.mrb[17].mxu0  ;;  %v1799_v55 = vld [vmem:[#allocation10 + $0x40] sm:$0xff]  }
 0x183   :  { %v371_v63 = vadd.f32 %v370_v62, %v2171_v61  ;;  %v372_v1 = vpop.f32.mrb[18].mxu0  ;;  %646 = vmatprep.mubr.bf16.mxu1 %v446_v54  ;;  %v1796_v54 = vld [vmem:[#allocation8 + $0x70] ss:$8 sps:$4 sm:$0xff]   ;;  %v1801_v62 = vld [vmem:[#allocation10 + $0x48] sm:$0xff]   ;;  %1587 = vmatprep.subr.bf16.mxu1 %v1799_v55 }
 0x184   :  { %v373_v2 = vadd.f32 %v372_v1, %v2167_v60  ;;  %v374_v3 = vpop.f32.mrb[19].mxu0  ;;  %647 = vmatmul.mubr.bf16.gmra.mrb[12].mxu1 %v445_v53  ;;  %v423_v5 = vmax.f32 %v369_v58, 0.0  ;;  %v1798_v53 = vld [vmem:[#allocation8 + $0x74] ss:$8 sps:$4 sm:$0xff]   ;;  %v1800_v58 = vld [vmem:[#allocation10] sm:$0xff]  }
 0x185   :  { %v375_v4 = vadd.f32 %v374_v3, %v2171_v61  ;;  %v424_v7 = vmax.f32 %v371_v63, 0.0  ;;  %833 = vmatprep.subr.bf16.mxu0 %v1798_v53  ;;  %1588 = vmatpush3.bf16.msra.mxu1 %v1800_v58  ;;  %v1804_v63 = vld [vmem:[#allocation10 + $0x10] sm:$0xff]   ;;  %v1805_v1 = vld [vmem:[#allocation10 + $0x58] sm:$0xff]   ;;  %v1807_v3 = vld [vmem:[#allocation10 + $0x60] sm:$0xff]  }
 0x186   :  { %v425_v6 = vmax.f32 %v373_v2, 0.0  ;;  %834 = vmatpush1.bf16.msra.mxu0 %v1796_v54  ;;  %1589 = vmatprep.subr.bf16.mxu1 %v1801_v62  ;;  %v1806_v2 = vld [vmem:[#allocation10 + $0x18] sm:$0xff]  }
 0x187   :  { %v426_v8 = vmax.f32 %v375_v4, 0.0  ;;  %v1808_v4 = vld [vmem:[#allocation10 + $0x20] sm:$0xff]  }
 0x188   :  { %v447_v9 = vpack.c.bf16 %v425_v6, %v423_v5  ;;  %v1809_v5 = vld [vmem:[#allocation10 + $0x68] sm:$0xff]  }
 0x189   :  { %v448_v10 = vpack.c.bf16 %v426_v8, %v424_v7  ;;  %v378_v11 = vpop.f32.mrb[20].mxu0  ;;  %v1810_v6 = vld [vmem:[#allocation10 + $0x28] sm:$0xff]   ;;  %v1811_v7 = vld [vmem:[#allocation10 + $0x70] sm:$0xff]  }
 0x18a   :  { %v379_v12 = vadd.f32 %v378_v11, %v2167_v60  ;;  %v380_v13 = vpop.f32.mrb[21].mxu0  ;;  %v1812_v8 = vld [vmem:[#allocation10 + $0x30] sm:$0xff]  }
 0x18b   :  { %v381_v14 = vadd.f32 %v380_v13, %v2171_v61  ;;  %v382_v15 = vpop.f32.mrb[22].mxu0  ;;  %654 = vmatprep.mubr.bf16.mxu1 %v448_v10  ;;  %v2208_v10 = vld [vmem:[%s2319_s4] ss:$0 sm:$0xff] }
 0x18c   :  { %v383_v16 = vadd.f32 %v382_v15, %v2167_v60  ;;  %v384_v17 = vpop.f32.mrb[23].mxu0  ;;  %655 = vmatmul.mubr.bf16.gmra.mrb[16].mxu1 %v447_v9  ;;  %v427_v19 = vmax.f32 %v379_v12, 0.0 }
 0x18d   :  { %v385_v18 = vadd.f32 %v384_v17, %v2171_v61  ;;  %v428_v21 = vmax.f32 %v381_v14, 0.0 }
 0x18e   :  { %v429_v20 = vmax.f32 %v383_v16, 0.0 }
 0x18f   :  { %v430_v22 = vmax.f32 %v385_v18, 0.0 }
 0x190   :  { %v449_v23 = vpack.c.bf16 %v429_v20, %v427_v19 }
 0x191   :  { %v450_v24 = vpack.c.bf16 %v430_v22, %v428_v21  ;;  %v388_v25 = vpop.f32.mrb[24].mxu0 }
 0x192   :  { %v389_v26 = vadd.f32 %v388_v25, %v2167_v60  ;;  %v390_v27 = vpop.f32.mrb[25].mxu0 }
 0x193   :  { %v391_v28 = vadd.f32 %v390_v27, %v2171_v61  ;;  %v392_v29 = vpop.f32.mrb[26].mxu0  ;;  %662 = vmatprep.mubr.bf16.mxu1 %v450_v24 }
 0x194   :  { %v393_v30 = vadd.f32 %v392_v29, %v2167_v60  ;;  %v394_v31 = vpop.f32.mrb[27].mxu0  ;;  %663 = vmatmul.mubr.bf16.gmra.mrb[20].mxu1 %v449_v23  ;;  %v431_v33 = vmax.f32 %v389_v26, 0.0 }
 0x195   :  { %v395_v32 = vadd.f32 %v394_v31, %v2171_v61  ;;  %v432_v35 = vmax.f32 %v391_v28, 0.0 }
 0x196   :  { %v433_v34 = vmax.f32 %v393_v30, 0.0 }
 0x197   :  { %v434_v36 = vmax.f32 %v395_v32, 0.0 }
 0x198   :  { %v451_v37 = vpack.c.bf16 %v433_v34, %v431_v33 }
 0x199   :  { %v452_v38 = vpack.c.bf16 %v434_v36, %v432_v35  ;;  %v398_v39 = vpop.f32.mrb[28].mxu0 }
 0x19a   :  { %v399_v40 = vadd.f32 %v398_v39, %v2167_v60  ;;  %v400_v41 = vpop.f32.mrb[29].mxu0 }
 0x19b   :  { %v401_v42 = vadd.f32 %v400_v41, %v2171_v61  ;;  %v402_v43 = vpop.f32.mrb[30].mxu0  ;;  %670 = vmatprep.mubr.bf16.mxu1 %v452_v38 }
 0x19c   :  { %v403_v44 = vadd.f32 %v402_v43, %v2167_v60  ;;  %v404_v45 = vpop.f32.mrb[31].mxu0  ;;  %671 = vmatmul.mubr.bf16.gmra.mrb[24].mxu1 %v451_v37  ;;  %v435_v47 = vmax.f32 %v399_v40, 0.0  ;;  %v1802_v60 = vld [vmem:[#allocation10 + $0x8] sm:$0xff]  }
 0x19d   :  { %v405_v46 = vadd.f32 %v404_v45, %v2171_v61  ;;  %v436_v49 = vmax.f32 %v401_v42, 0.0  ;;  %v1803_v61 = vld [vmem:[#allocation10 + $0x50] sm:$0xff]   ;;  %1590 = vmatpush3.bf16.msra.mxu1 %v1802_v60 }
 0x19e   :  { %v437_v48 = vmax.f32 %v403_v44, 0.0  ;;  %1591 = vmatprep.subr.bf16.mxu1 %v1803_v61 }
 0x19f   :  { %v438_v50 = vmax.f32 %v405_v46, 0.0 }
 0x1a0   :  { %v453_v51 = vpack.c.bf16 %v437_v48, %v435_v47 }
 0x1a1   :  { %v454_v52 = vpack.c.bf16 %v438_v50, %v436_v49  ;;  %1592 = vmatpush3.bf16.msra.mxu1 %v1804_v63 }
 0x1a2   :  { %1593 = vmatprep.subr.bf16.mxu1 %v1805_v1 }
 0x1a3   :  { %678 = vmatprep.mubr.bf16.mxu1 %v454_v52 }
 0x1a4   :  { %679 = vmatmul.mubr.bf16.gmra.mrb[28].mxu1 %v453_v51 }
 0x1a5   :  { %1594 = vmatpush3.bf16.msra.mxu1 %v1806_v2 }
 0x1a6   :  { %1595 = vmatprep.subr.bf16.mxu1 %v1807_v3 }
 0x1a9   :  { %1596 = vmatpush3.bf16.msra.mxu1 %v1808_v4 }
 0x1aa   :  { %1597 = vmatprep.subr.bf16.mxu1 %v1809_v5 }
 0x1ad   :  { %1598 = vmatpush3.bf16.msra.mxu1 %v1810_v6 }
 0x1ae   :  { %1599 = vmatprep.subr.bf16.mxu1 %v1811_v7 }
 0x1b1   :  { %1600 = vmatpush3.bf16.msra.mxu1 %v1812_v8 }
 0x23f   :  { %v1539_v9 = vpop.f32.mrb[0].mxu1 }
 0x240   :  { %v1540_v11 = vpop.f32.mrb[1].mxu1 }
 0x241   :  { %v1541_v12 = vadd.f32 %v1540_v11, %v1539_v9  ;;  %v1542_v13 = vpop.f32.mrb[2].mxu1 }
 0x242   :  { %v1543_v14 = vpop.f32.mrb[3].mxu1 }
 0x243   :  { %v625_v15 = vadd.f32 %v1541_v12, %v2208_v10  ;;  %v1544_v16 = vadd.f32 %v1543_v14, %v1542_v13 }
 0x245   :  { %v628_v17 = vadd.f32 %v1544_v16, %v2208_v10  ;;  %v687_v18 = vmax.f32 %v625_v15, 0.0 }
 0x247   :  { %v688_v19 = vmax.f32 %v628_v17, 0.0  ;;  %v1545_v20 = vpop.f32.mrb[4].mxu1 }
 0x248   :  { %v1546_v21 = vpop.f32.mrb[5].mxu1 }
 0x249   :  { %v703_v22 = vpack.c.bf16 %v688_v19, %v687_v18  ;;  %v1547_v23 = vadd.f32 %v1546_v21, %v1545_v20  ;;  %v1548_v24 = vpop.f32.mrb[6].mxu1 }
 0x24a   :  { %v1549_v25 = vpop.f32.mrb[7].mxu1 }
 0x24b   :  { %v633_v26 = vadd.f32 %v1547_v23, %v2208_v10  ;;  %v1550_v27 = vadd.f32 %v1549_v25, %v1548_v24  ;;  %852 = vmatmul.mubr.bf16.vlgmr.msra.gmra.mrb[32].mxu0 %v703_v22 }
 0x24c   :  { %861 = vmatprep.mubr.bf16.mxu0 %v1997_v0 }
 0x24d   :  { %v636_v28 = vadd.f32 %v1550_v27, %v2208_v10  ;;  %v689_v29 = vmax.f32 %v633_v26, 0.0 }
 0x24f   :  { %v690_v30 = vmax.f32 %v636_v28, 0.0  ;;  %v1551_v31 = vpop.f32.mrb[8].mxu1 }
 0x250   :  { %v1552_v32 = vpop.f32.mrb[9].mxu1 }
 0x251   :  { %v1553_v33 = vadd.f32 %v1552_v32, %v1551_v31  ;;  %v1554_v34 = vpop.f32.mrb[10].mxu1  ;;  %v704_v35 = vpack.c.bf16 %v690_v30, %v689_v29 }
 0x252   :  { %v1555_v36 = vpop.f32.mrb[11].mxu1 }
 0x253   :  { %v641_v37 = vadd.f32 %v1553_v33, %v2208_v10  ;;  %v1556_v38 = vadd.f32 %v1555_v36, %v1554_v34  ;;  %862 = vmatmul.mubr.bf16.gmra.mrb[36].mxu0 %v704_v35 }
 0x254   :  { %871 = vmatprep.mubr.bf16.mxu0 %v1997_v0 }
 0x255   :  { %v644_v39 = vadd.f32 %v1556_v38, %v2208_v10  ;;  %v691_v40 = vmax.f32 %v641_v37, 0.0 }
 0x257   :  { %v692_v41 = vmax.f32 %v644_v39, 0.0  ;;  %v1557_v42 = vpop.f32.mrb[12].mxu1  ;;  %v1813_v39 = vld [vmem:[#allocation10 + $0x78] sm:$0xff]  }
 0x258   :  { %v1558_v43 = vpop.f32.mrb[13].mxu1  ;;  %1601 = vmatprep.subr.bf16.mxu1 %v1813_v39 }
 0x259   :  { %v1559_v44 = vadd.f32 %v1558_v43, %v1557_v42  ;;  %v1560_v45 = vpop.f32.mrb[14].mxu1  ;;  %v705_v46 = vpack.c.bf16 %v692_v41, %v691_v40  ;;  %v1814_v40 = vld [vmem:[#allocation10 + $0x38] sm:$0xff]   ;;  %v1815_v41 = vld [vmem:[#allocation11] sm:$0xff]   ;;  %v1816_v42 = vld [vmem:[#allocation11 + $0x8] sm:$0xff]  }
 0x25a   :  { %v1561_v47 = vpop.f32.mrb[15].mxu1  ;;  %1602 = vmatpush3.bf16.msra.mxu1 %v1814_v40  ;;  %1667 = vmatprep.subr.bf16.mxu0 %v1815_v41  ;;  %v1817_v43 = vld [vmem:[#allocation11 + $0x10] sm:$0xff]  }
 0x25b   :  { %v649_v48 = vadd.f32 %v1559_v44, %v2208_v10  ;;  %v1562_v49 = vadd.f32 %v1561_v47, %v1560_v45  ;;  %872 = vmatmul.mubr.bf16.gmra.mrb[40].mxu0 %v705_v46  ;;  %1699 = vmatprep.subr.bf16.mxu1 %v1815_v41 }
 0x25c   :  { %881 = vmatprep.mubr.bf16.mxu0 %v1997_v0  ;;  %1668 = vmatpush3.bf16.msra.mxu0 %v1815_v41 }
 0x25d   :  { %v652_v50 = vadd.f32 %v1562_v49, %v2208_v10  ;;  %v693_v51 = vmax.f32 %v649_v48, 0.0  ;;  %1669 = vmatprep.subr.bf16.mxu0 %v1816_v42 }
 0x25f   :  { %v694_v52 = vmax.f32 %v652_v50, 0.0  ;;  %v1563_v53 = vpop.f32.mrb[16].mxu1 }
 0x260   :  { %v1564_v54 = vpop.f32.mrb[17].mxu1  ;;  %1670 = vmatpush3.bf16.msra.mxu0 %v1816_v42 }
 0x261   :  { %v1565_v55 = vadd.f32 %v1564_v54, %v1563_v53  ;;  %v1566_v58 = vpop.f32.mrb[18].mxu1  ;;  %v706_v62 = vpack.c.bf16 %v694_v52, %v693_v51  ;;  %1671 = vmatprep.subr.bf16.mxu0 %v1817_v43 }
 0x262   :  { %v1567_v60 = vpop.f32.mrb[19].mxu1 }
 0x263   :  { %v657_v61 = vadd.f32 %v1565_v55, %v2208_v10  ;;  %v1568_v63 = vadd.f32 %v1567_v60, %v1566_v58  ;;  %882 = vmatmul.mubr.bf16.gmra.mrb[44].mxu0 %v706_v62 }
 0x264   :  { %891 = vmatprep.mubr.bf16.mxu0 %v1997_v0  ;;  %1672 = vmatpush3.bf16.msra.mxu0 %v1817_v43 }
 0x265   :  { %v660_v1 = vadd.f32 %v1568_v63, %v2208_v10  ;;  %v695_v2 = vmax.f32 %v657_v61, 0.0 }
 0x267   :  { %v696_v3 = vmax.f32 %v660_v1, 0.0  ;;  %v1569_v4 = vpop.f32.mrb[20].mxu1 }
 0x268   :  { %v1570_v5 = vpop.f32.mrb[21].mxu1 }
 0x269   :  { %v1571_v6 = vadd.f32 %v1570_v5, %v1569_v4  ;;  %v1572_v7 = vpop.f32.mrb[22].mxu1  ;;  %v707_v8 = vpack.c.bf16 %v696_v3, %v695_v2 }
 0x26a   :  { %v1573_v9 = vpop.f32.mrb[23].mxu1 }
 0x26b   :  { %v665_v11 = vadd.f32 %v1571_v6, %v2208_v10  ;;  %v1574_v12 = vadd.f32 %v1573_v9, %v1572_v7  ;;  %892 = vmatmul.mubr.bf16.gmra.mrb[48].mxu0 %v707_v8 }
 0x26c   :  { %901 = vmatprep.mubr.bf16.mxu0 %v1997_v0 }
 0x26d   :  { %v668_v13 = vadd.f32 %v1574_v12, %v2208_v10  ;;  %v697_v14 = vmax.f32 %v665_v11, 0.0 }
 0x26f   :  { %v698_v15 = vmax.f32 %v668_v13, 0.0  ;;  %v1575_v16 = vpop.f32.mrb[24].mxu1 }
 0x270   :  { %v1576_v17 = vpop.f32.mrb[25].mxu1 }
 0x271   :  { %v1577_v18 = vadd.f32 %v1576_v17, %v1575_v16  ;;  %v1578_v19 = vpop.f32.mrb[26].mxu1  ;;  %v708_v20 = vpack.c.bf16 %v698_v15, %v697_v14 }
 0x272   :  { %v1579_v21 = vpop.f32.mrb[27].mxu1 }
 0x273   :  { %v673_v22 = vadd.f32 %v1577_v18, %v2208_v10  ;;  %v1580_v23 = vadd.f32 %v1579_v21, %v1578_v19  ;;  %902 = vmatmul.mubr.bf16.gmra.mrb[52].mxu0 %v708_v20 }
 0x274   :  { %911 = vmatprep.mubr.bf16.mxu0 %v1997_v0 }
 0x275   :  { %v676_v24 = vadd.f32 %v1580_v23, %v2208_v10  ;;  %v699_v25 = vmax.f32 %v673_v22, 0.0 }
 0x277   :  { %v700_v26 = vmax.f32 %v676_v24, 0.0  ;;  %v1581_v27 = vpop.f32.mrb[28].mxu1 }
 0x278   :  { %v1582_v28 = vpop.f32.mrb[29].mxu1 }
 0x279   :  { %v1583_v29 = vadd.f32 %v1582_v28, %v1581_v27  ;;  %v1584_v30 = vpop.f32.mrb[30].mxu1  ;;  %v709_v31 = vpack.c.bf16 %v700_v26, %v699_v25 }
 0x27a   :  { %v1585_v32 = vpop.f32.mrb[31].mxu1 }
 0x27b   :  { %v681_v33 = vadd.f32 %v1583_v29, %v2208_v10  ;;  %v1586_v34 = vadd.f32 %v1585_v32, %v1584_v30  ;;  %912 = vmatmul.mubr.bf16.gmra.mrb[56].mxu0 %v709_v31 }
 0x27c   :  { %921 = vmatprep.mubr.bf16.mxu0 %v1997_v0  ;;  %v727_v0 = vld [vmem:[%s2321_s6] sm:$0x3] }
 0x27d   :  { %v684_v35 = vadd.f32 %v1586_v34, %v2208_v10  ;;  %v701_v36 = vmax.f32 %v681_v33, 0.0  ;;  %v2238_v10 = vrot.slane %v727_v0, %v158_v57  ;;  %v2242_v44 = vrot.slane %v727_v0, %v162_v59 }
 0x27f   :  { %v702_v37 = vmax.f32 %v684_v35, 0.0 }
 0x281   :  { %v710_v38 = vpack.c.bf16 %v702_v37, %v701_v36 }
 0x283   :  { %922 = vmatmul.mubr.bf16.gmra.mrb[60].mxu0 %v710_v38 }
 0x31e   :  { %v853_v45 = vpop.f32.mrb[32].mxu0 }
 0x31f   :  { %v854_v46 = vadd.f32 %v853_v45, %v2238_v10  ;;  %v855_v47 = vpop.f32.mrb[33].mxu0 }
 0x320   :  { %v856_v48 = vadd.f32 %v855_v47, %v2242_v44  ;;  %v857_v49 = vpop.f32.mrb[34].mxu0 }
 0x321   :  { %v858_v50 = vadd.f32 %v857_v49, %v2238_v10  ;;  %v859_v51 = vpop.f32.mrb[35].mxu0  ;;  %v932_v53 = vmax.f32 %v854_v46, 0.0 }
 0x322   :  { %v860_v52 = vadd.f32 %v859_v51, %v2242_v44  ;;  %v933_v57 = vmax.f32 %v856_v48, 0.0 }
 0x323   :  { %v934_v54 = vmax.f32 %v858_v50, 0.0 }
 0x324   :  { %v935_v55 = vmax.f32 %v860_v52, 0.0 }
 0x325   :  { %v964_v58 = vpack.c.bf16 %v934_v54, %v932_v53 }
 0x326   :  { %v965_v56 = vpack.c.bf16 %v935_v55, %v933_v57  ;;  %v863_v59 = vpop.f32.mrb[36].mxu0 }
 0x327   :  { %v864_v62 = vadd.f32 %v863_v59, %v2238_v10  ;;  %v865_v60 = vpop.f32.mrb[37].mxu0 }
 0x328   :  { %v866_v61 = vadd.f32 %v865_v60, %v2242_v44  ;;  %v867_v63 = vpop.f32.mrb[38].mxu0  ;;  %1147 = vmatprep.mubr.bf16.mxu1 %v965_v56 }
 0x329   :  { %v868_v1 = vadd.f32 %v867_v63, %v2238_v10  ;;  %v869_v2 = vpop.f32.mrb[39].mxu0  ;;  %1148 = vmatmul.mubr.bf16.vlgmr.msra.gmra.mrb[32].mxu1 %v964_v58  ;;  %v936_v4 = vmax.f32 %v864_v62, 0.0 }
 0x32a   :  { %v870_v3 = vadd.f32 %v869_v2, %v2242_v44  ;;  %1707 = vmatpush3.bf16.msra.mxu1 %v1815_v41  ;;  %v937_v6 = vmax.f32 %v866_v61, 0.0 }
 0x32b   :  { %v938_v5 = vmax.f32 %v868_v1, 0.0  ;;  %1700 = vmatprep.subr.bf16.mxu1 %v1816_v42 }
 0x32c   :  { %v939_v7 = vmax.f32 %v870_v3, 0.0 }
 0x32d   :  { %v966_v8 = vpack.c.bf16 %v938_v5, %v936_v4 }
 0x32e   :  { %v967_v9 = vpack.c.bf16 %v939_v7, %v937_v6  ;;  %v873_v11 = vpop.f32.mrb[40].mxu0  ;;  %1708 = vmatpush3.bf16.msra.mxu1 %v1816_v42 }
 0x32f   :  { %v874_v12 = vadd.f32 %v873_v11, %v2238_v10  ;;  %v875_v13 = vpop.f32.mrb[41].mxu0  ;;  %1701 = vmatprep.subr.bf16.mxu1 %v1817_v43 }
 0x330   :  { %v876_v14 = vadd.f32 %v875_v13, %v2242_v44  ;;  %v877_v15 = vpop.f32.mrb[42].mxu0  ;;  %1155 = vmatprep.mubr.bf16.mxu1 %v967_v9 }
 0x331   :  { %v878_v16 = vadd.f32 %v877_v15, %v2238_v10  ;;  %v879_v17 = vpop.f32.mrb[43].mxu0  ;;  %1156 = vmatmul.mubr.bf16.gmra.mrb[36].mxu1 %v966_v8  ;;  %v940_v19 = vmax.f32 %v874_v12, 0.0 }
 0x332   :  { %v880_v18 = vadd.f32 %v879_v17, %v2242_v44  ;;  %1709 = vmatpush3.bf16.msra.mxu1 %v1817_v43  ;;  %v941_v21 = vmax.f32 %v876_v14, 0.0 }
 0x333   :  { %v942_v20 = vmax.f32 %v878_v16, 0.0 }
 0x334   :  { %v943_v22 = vmax.f32 %v880_v18, 0.0 }
 0x335   :  { %v968_v23 = vpack.c.bf16 %v942_v20, %v940_v19 }
 0x336   :  { %v969_v24 = vpack.c.bf16 %v943_v22, %v941_v21  ;;  %v883_v25 = vpop.f32.mrb[44].mxu0 }
 0x337   :  { %v884_v26 = vadd.f32 %v883_v25, %v2238_v10  ;;  %v885_v27 = vpop.f32.mrb[45].mxu0 }
 0x338   :  { %v886_v28 = vadd.f32 %v885_v27, %v2242_v44  ;;  %v887_v29 = vpop.f32.mrb[46].mxu0  ;;  %1163 = vmatprep.mubr.bf16.mxu1 %v969_v24 }
 0x339   :  { %v888_v30 = vadd.f32 %v887_v29, %v2238_v10  ;;  %v889_v31 = vpop.f32.mrb[47].mxu0  ;;  %1164 = vmatmul.mubr.bf16.gmra.mrb[40].mxu1 %v968_v23  ;;  %v944_v33 = vmax.f32 %v884_v26, 0.0 }
 0x33a   :  { %v890_v32 = vadd.f32 %v889_v31, %v2242_v44  ;;  %v945_v35 = vmax.f32 %v886_v28, 0.0 }
 0x33b   :  { %v946_v34 = vmax.f32 %v888_v30, 0.0 }
 0x33c   :  { %v947_v36 = vmax.f32 %v890_v32, 0.0 }
 0x33d   :  { %v970_v37 = vpack.c.bf16 %v946_v34, %v944_v33  ;;  %v1818_v33 = vld [vmem:[#allocation11 + $0x18] sm:$0xff]   ;;  %v1819_v34 = vld [vmem:[#allocation11 + $0x20] sm:$0xff]  }
 0x33e   :  { %v971_v38 = vpack.c.bf16 %v947_v36, %v945_v35  ;;  %v893_v39 = vpop.f32.mrb[48].mxu0  ;;  %1673 = vmatprep.subr.bf16.mxu0 %v1818_v33  ;;  %1702 = vmatprep.subr.bf16.mxu1 %v1818_v33  ;;  %v1822_v35 = vld [vmem:[#allocation11 + $0x38] sm:$0xff]  }
 0x33f   :  { %v894_v40 = vadd.f32 %v893_v39, %v2238_v10  ;;  %v895_v41 = vpop.f32.mrb[49].mxu0  ;;  %1674 = vmatpush3.bf16.msra.mxu0 %v1818_v33  ;;  %1710 = vmatpush3.bf16.msra.mxu1 %v1818_v33 }
 0x340   :  { %v896_v42 = vadd.f32 %v895_v41, %v2242_v44  ;;  %v897_v43 = vpop.f32.mrb[50].mxu0  ;;  %1171 = vmatprep.mubr.bf16.mxu1 %v971_v38  ;;  %1675 = vmatprep.subr.bf16.mxu0 %v1819_v34 }
 0x341   :  { %v898_v0 = vadd.f32 %v897_v43, %v2238_v10  ;;  %v899_v45 = vpop.f32.mrb[51].mxu0  ;;  %1172 = vmatmul.mubr.bf16.gmra.mrb[44].mxu1 %v970_v37  ;;  %v948_v47 = vmax.f32 %v894_v40, 0.0  ;;  %1703 = vmatprep.subr.bf16.mxu1 %v1819_v34  ;;  %v2279_v37 = vld [vmem:[%s2323_s8] ss:$0 sm:$0xff] }
 0x342   :  { %v900_v46 = vadd.f32 %v899_v45, %v2242_v44  ;;  %v949_v49 = vmax.f32 %v896_v42, 0.0 }
 0x343   :  { %v950_v48 = vmax.f32 %v898_v0, 0.0  ;;  %1676 = vmatpush3.bf16.msra.mxu0 %v1819_v34  ;;  %1711 = vmatpush3.bf16.msra.mxu1 %v1819_v34 }
 0x344   :  { %v951_v50 = vmax.f32 %v900_v46, 0.0 }
 0x345   :  { %v972_v51 = vpack.c.bf16 %v950_v48, %v948_v47 }
 0x346   :  { %v973_v52 = vpack.c.bf16 %v951_v50, %v949_v49  ;;  %v903_v53 = vpop.f32.mrb[52].mxu0 }
 0x347   :  { %v904_v54 = vadd.f32 %v903_v53, %v2238_v10  ;;  %v905_v57 = vpop.f32.mrb[53].mxu0 }
 0x348   :  { %v906_v55 = vadd.f32 %v905_v57, %v2242_v44  ;;  %v907_v58 = vpop.f32.mrb[54].mxu0  ;;  %1179 = vmatprep.mubr.bf16.mxu1 %v973_v52 }
 0x349   :  { %v908_v56 = vadd.f32 %v907_v58, %v2238_v10  ;;  %v909_v59 = vpop.f32.mrb[55].mxu0  ;;  %1180 = vmatmul.mubr.bf16.gmra.mrb[48].mxu1 %v972_v51  ;;  %v952_v60 = vmax.f32 %v904_v54, 0.0 }
 0x34a   :  { %v910_v62 = vadd.f32 %v909_v59, %v2242_v44  ;;  %v953_v63 = vmax.f32 %v906_v55, 0.0 }
 0x34b   :  { %v954_v61 = vmax.f32 %v908_v56, 0.0 }
 0x34c   :  { %v955_v1 = vmax.f32 %v910_v62, 0.0 }
 0x34d   :  { %v974_v2 = vpack.c.bf16 %v954_v61, %v952_v60 }
 0x34e   :  { %v975_v3 = vpack.c.bf16 %v955_v1, %v953_v63  ;;  %v913_v4 = vpop.f32.mrb[56].mxu0 }
 0x34f   :  { %v914_v5 = vadd.f32 %v913_v4, %v2238_v10  ;;  %v915_v6 = vpop.f32.mrb[57].mxu0 }
 0x350   :  { %v916_v7 = vadd.f32 %v915_v6, %v2242_v44  ;;  %v917_v8 = vpop.f32.mrb[58].mxu0  ;;  %1187 = vmatprep.mubr.bf16.mxu1 %v975_v3 }
 0x351   :  { %v918_v9 = vadd.f32 %v917_v8, %v2238_v10  ;;  %v919_v11 = vpop.f32.mrb[59].mxu0  ;;  %1188 = vmatmul.mubr.bf16.gmra.mrb[52].mxu1 %v974_v2  ;;  %v956_v13 = vmax.f32 %v914_v5, 0.0 }
 0x352   :  { %v920_v12 = vadd.f32 %v919_v11, %v2242_v44  ;;  %v957_v15 = vmax.f32 %v916_v7, 0.0 }
 0x353   :  { %v958_v14 = vmax.f32 %v918_v9, 0.0 }
 0x354   :  { %v959_v16 = vmax.f32 %v920_v12, 0.0 }
 0x355   :  { %v976_v17 = vpack.c.bf16 %v958_v14, %v956_v13 }
 0x356   :  { %v977_v18 = vpack.c.bf16 %v959_v16, %v957_v15  ;;  %v923_v19 = vpop.f32.mrb[60].mxu0 }
 0x357   :  { %v924_v20 = vadd.f32 %v923_v19, %v2238_v10  ;;  %v925_v21 = vpop.f32.mrb[61].mxu0 }
 0x358   :  { %v926_v22 = vadd.f32 %v925_v21, %v2242_v44  ;;  %v927_v23 = vpop.f32.mrb[62].mxu0  ;;  %1195 = vmatprep.mubr.bf16.mxu1 %v977_v18 }
 0x359   :  { %v928_v24 = vadd.f32 %v927_v23, %v2238_v10  ;;  %v929_v25 = vpop.f32.mrb[63].mxu0  ;;  %1196 = vmatmul.mubr.bf16.gmra.mrb[56].mxu1 %v976_v17  ;;  %v960_v27 = vmax.f32 %v924_v20, 0.0  ;;  %v1820_v10 = vld [vmem:[#allocation11 + $0x28] sm:$0xff]  }
 0x35a   :  { %v930_v26 = vadd.f32 %v929_v25, %v2242_v44  ;;  %v961_v29 = vmax.f32 %v926_v22, 0.0  ;;  %1677 = vmatprep.subr.bf16.mxu0 %v1820_v10  ;;  %1704 = vmatprep.subr.bf16.mxu1 %v1820_v10  ;;  %v1821_v44 = vld [vmem:[#allocation11 + $0x30] sm:$0xff]  }
 0x35b   :  { %v962_v28 = vmax.f32 %v928_v24, 0.0  ;;  %1678 = vmatpush3.bf16.msra.mxu0 %v1820_v10  ;;  %1712 = vmatpush3.bf16.msra.mxu1 %v1820_v10 }
 0x35c   :  { %v963_v30 = vmax.f32 %v930_v26, 0.0  ;;  %1679 = vmatprep.subr.bf16.mxu0 %v1821_v44  ;;  %1705 = vmatprep.subr.bf16.mxu1 %v1821_v44 }
 0x35d   :  { %v978_v31 = vpack.c.bf16 %v962_v28, %v960_v27 }
 0x35e   :  { %v979_v32 = vpack.c.bf16 %v963_v30, %v961_v29 }
 0x35f   :  { %1680 = vmatpush3.bf16.msra.mxu0 %v1821_v44  ;;  %1713 = vmatpush3.bf16.msra.mxu1 %v1821_v44 }
 0x360   :  { %1203 = vmatprep.mubr.bf16.mxu1 %v979_v32  ;;  %1681 = vmatprep.subr.bf16.mxu0 %v1822_v35 }
 0x361   :  { %1204 = vmatmul.mubr.bf16.gmra.mrb[60].mxu1 %v978_v31  ;;  %1706 = vmatprep.subr.bf16.mxu1 %v1822_v35 }
 0x363   :  { %1682 = vmatpush3.bf16.msra.mxu0 %v1822_v35  ;;  %1714 = vmatpush3.bf16.msra.mxu1 %v1822_v35 }
 0x3fc   :  { %v1603_v36 = vpop.f32.mrb[32].mxu1 }
 0x3fd   :  { %v1604_v38 = vpop.f32.mrb[33].mxu1 }
 0x3fe   :  { %v1605_v39 = vadd.f32 %v1604_v38, %v1603_v36  ;;  %v1606_v40 = vpop.f32.mrb[34].mxu1 }
 0x3ff   :  { %v1607_v41 = vpop.f32.mrb[35].mxu1 }
 0x400   :  { %v1150_v42 = vadd.f32 %v1605_v39, %v2279_v37  ;;  %v1608_v43 = vadd.f32 %v1607_v41, %v1606_v40 }
 0x402   :  { %v1153_v0 = vadd.f32 %v1608_v43, %v2279_v37  ;;  %v1212_v45 = vmax.f32 %v1150_v42, 0.0 }
 0x404   :  { %v1213_v46 = vmax.f32 %v1153_v0, 0.0  ;;  %v1609_v47 = vpop.f32.mrb[36].mxu1 }
 0x405   :  { %v1610_v48 = vpop.f32.mrb[37].mxu1 }
 0x406   :  { %v1611_v49 = vadd.f32 %v1610_v48, %v1609_v47  ;;  %v1612_v50 = vpop.f32.mrb[38].mxu1  ;;  %v1228_v51 = vpack.c.bf16 %v1213_v46, %v1212_v45 }
 0x407   :  { %v1613_v52 = vpop.f32.mrb[39].mxu1 }
 0x408   :  { %v1158_v53 = vadd.f32 %v1611_v49, %v2279_v37  ;;  %v1614_v54 = vadd.f32 %v1613_v52, %v1612_v50  ;;  %1683 = vmatprep.mubr.bf16.mxu0 %v1228_v51 }
 0x40a   :  { %v1161_v57 = vadd.f32 %v1614_v54, %v2279_v37  ;;  %v1214_v55 = vmax.f32 %v1158_v53, 0.0 }
 0x40c   :  { %v1215_v58 = vmax.f32 %v1161_v57, 0.0  ;;  %v1615_v56 = vpop.f32.mrb[40].mxu1 }
 0x40d   :  { %v1616_v59 = vpop.f32.mrb[41].mxu1 }
 0x40e   :  { %v1229_v62 = vpack.c.bf16 %v1215_v58, %v1214_v55  ;;  %v1617_v60 = vadd.f32 %v1616_v59, %v1615_v56  ;;  %v1618_v61 = vpop.f32.mrb[42].mxu1 }
 0x40f   :  { %v1619_v63 = vpop.f32.mrb[43].mxu1 }
 0x410   :  { %v1166_v1 = vadd.f32 %v1617_v60, %v2279_v37  ;;  %v1620_v2 = vadd.f32 %v1619_v63, %v1618_v61  ;;  %1684 = vmatmul.mubr.bf16.vlgmr.msra.gmra.mrb[64].mxu0 %v1229_v62  ;;  %v1514_v61 = vld [vmem:[%s2325_s10] ss:$0 sm:$0xff]  ;;  %s1998_s10 = smov [#allocation13]  }
 0x411   :  { %s1425_s23 = sshll.u32 %s1998_s10, 4  ;;  %s1426_s23 = int_to_ptr.vmem [resolvable:$true] %s1425_s23 }
 0x412   :  { %v1169_v3 = vadd.f32 %v1620_v2, %v2279_v37  ;;  %v1216_v4 = vmax.f32 %v1166_v1, 0.0  ;;  %s1955_s18 = scalar_lea.vmem %s1426_s23, 2048  ;;  %p1960_p7 = scmp.lt.s32.totalorder %s1426_s23, %s1426_s23 }
 0x413   :  { %p1956_p6 = scmp.ne.s32.totalorder %s1426_s23, %s1955_s18  ;;  %p1961_p8 = scmp.lt.s32.totalorder %s1955_s18, %s1955_s18 }
 0x414   :  { %v1217_v5 = vmax.f32 %v1169_v3, 0.0  ;;  %v1621_v6 = vpop.f32.mrb[44].mxu1 }
 0x415   :  { %v1622_v7 = vpop.f32.mrb[45].mxu1  ;;  %p1962_p9 = por %p1961_p8, %p1960_p7 }
 0x416   :  { %v1623_v8 = vadd.f32 %v1622_v7, %v1621_v6  ;;  %v1624_v9 = vpop.f32.mrb[46].mxu1  ;;  %v1230_v11 = vpack.c.bf16 %v1217_v5, %v1216_v4 }
 0x417   :  { %v1625_v12 = vpop.f32.mrb[47].mxu1  ;;  %p1963_p10 = pnand %p1962_p9, %p1956_p6 }
 0x418   :  { %v1174_v13 = vadd.f32 %v1623_v8, %v2279_v37  ;;  %v1626_v14 = vadd.f32 %v1625_v12, %v1624_v9  ;;  %1687 = vmatprep.mubr.bf16.mxu0 %v1230_v11 }
 0x41a   :  { %v1177_v15 = vadd.f32 %v1626_v14, %v2279_v37  ;;  %v1218_v16 = vmax.f32 %v1174_v13, 0.0 }
 0x41c   :  { %v1219_v17 = vmax.f32 %v1177_v15, 0.0  ;;  %v1627_v18 = vpop.f32.mrb[48].mxu1 }
 0x41d   :  { %v1628_v19 = vpop.f32.mrb[49].mxu1 }
 0x41e   :  { %v1629_v20 = vadd.f32 %v1628_v19, %v1627_v18  ;;  %v1630_v21 = vpop.f32.mrb[50].mxu1  ;;  %v1231_v22 = vpack.c.bf16 %v1219_v17, %v1218_v16 }
 0x41f   :  { %v1631_v23 = vpop.f32.mrb[51].mxu1 }
 0x420   :  { %v1182_v24 = vadd.f32 %v1629_v20, %v2279_v37  ;;  %v1632_v25 = vadd.f32 %v1631_v23, %v1630_v21  ;;  %1688 = vmatmul.mubr.bf16.gmra.mrb[68].mxu0 %v1231_v22 }
 0x422   :  { %v1185_v26 = vadd.f32 %v1632_v25, %v2279_v37  ;;  %v1220_v27 = vmax.f32 %v1182_v24, 0.0 }
 0x424   :  { %v1221_v28 = vmax.f32 %v1185_v26, 0.0  ;;  %v1633_v29 = vpop.f32.mrb[52].mxu1 }
 0x425   :  { %v1634_v30 = vpop.f32.mrb[53].mxu1 }
 0x426   :  { %v1635_v31 = vadd.f32 %v1634_v30, %v1633_v29  ;;  %v1636_v32 = vpop.f32.mrb[54].mxu1  ;;  %v1232_v33 = vpack.c.bf16 %v1221_v28, %v1220_v27 }
 0x427   :  { %v1637_v34 = vpop.f32.mrb[55].mxu1 }
 0x428   :  { %v1190_v10 = vadd.f32 %v1635_v31, %v2279_v37  ;;  %v1638_v44 = vadd.f32 %v1637_v34, %v1636_v32  ;;  %1691 = vmatprep.mubr.bf16.mxu1 %v1232_v33 }
 0x42a   :  { %v1193_v35 = vadd.f32 %v1638_v44, %v2279_v37  ;;  %v1222_v36 = vmax.f32 %v1190_v10, 0.0 }
 0x42c   :  { %v1223_v38 = vmax.f32 %v1193_v35, 0.0  ;;  %v1639_v39 = vpop.f32.mrb[56].mxu1 }
 0x42d   :  { %v1640_v40 = vpop.f32.mrb[57].mxu1 }
 0x42e   :  { %v1233_v41 = vpack.c.bf16 %v1223_v38, %v1222_v36  ;;  %v1641_v42 = vadd.f32 %v1640_v40, %v1639_v39  ;;  %v1642_v43 = vpop.f32.mrb[58].mxu1 }
 0x42f   :  { %v1643_v0 = vpop.f32.mrb[59].mxu1 }
 0x430   :  { %v1198_v45 = vadd.f32 %v1641_v42, %v2279_v37  ;;  %v1644_v46 = vadd.f32 %v1643_v0, %v1642_v43  ;;  %1692 = vmatmul.mubr.bf16.vlgmr.msra.gmra.mrb[64].mxu1 %v1233_v41 }
 0x432   :  { %v1201_v47 = vadd.f32 %v1644_v46, %v2279_v37  ;;  %v1224_v48 = vmax.f32 %v1198_v45, 0.0 }
 0x434   :  { %v1225_v49 = vmax.f32 %v1201_v47, 0.0  ;;  %v1645_v50 = vpop.f32.mrb[60].mxu1 }
 0x435   :  { %v1646_v51 = vpop.f32.mrb[61].mxu1 }
 0x436   :  { %v1647_v52 = vadd.f32 %v1646_v51, %v1645_v50  ;;  %v1648_v53 = vpop.f32.mrb[62].mxu1  ;;  %v1234_v54 = vpack.c.bf16 %v1225_v49, %v1224_v48 }
 0x437   :  { %v1649_v57 = vpop.f32.mrb[63].mxu1 }
 0x438   :  { %v1206_v55 = vadd.f32 %v1647_v52, %v2279_v37  ;;  %v1650_v58 = vadd.f32 %v1649_v57, %v1648_v53  ;;  %1695 = vmatprep.mubr.bf16.mxu1 %v1234_v54 }
 0x43a   :  { %v1209_v56 = vadd.f32 %v1650_v58, %v2279_v37  ;;  %v1226_v59 = vmax.f32 %v1206_v55, 0.0 }
 0x43c   :  { %v1227_v62 = vmax.f32 %v1209_v56, 0.0 }
 0x43e   :  { %v1235_v60 = vpack.c.bf16 %v1227_v62, %v1226_v59 }
 0x440   :  { %1696 = vmatmul.mubr.bf16.gmra.mrb[68].mxu1 %v1235_v60 }
 0x4e3   :  { %v1685_v63 = vpop.f32.mrb[64].mxu0 }
 0x4e4   :  { %v1350_v1 = vadd.f32 %v1685_v63, %v1514_v61  ;;  %v1341_v2 = vpop.f32.mrb[65].mxu0 }
 0x4e5   :  { %v1342_v3 = vadd.f32 %v1514_v61, %v1341_v2  ;;  %v1686_v4 = vpop.f32.mrb[66].mxu0 }
 0x4e6   :  { %1406 = vst [vmem:[#allocation13 + $0x10] sm:$0xff] %v1350_v1  ;;  %v1353_v5 = vadd.f32 %v1686_v4, %v1514_v61  ;;  %v1344_v6 = vpop.f32.mrb[67].mxu0 }
 0x4e7   :  { %1404 = vst [vmem:[#allocation13] sm:$0xff] %v1342_v3  ;;  %v1345_v7 = vadd.f32 %v1514_v61, %v1344_v6 }
 0x4e8   :  { %1407 = vst [vmem:[#allocation13 + $0x18] sm:$0xff] %v1353_v5 }
 0x4e9   :  { %1405 = vst [vmem:[#allocation13 + $0x8] sm:$0xff] %v1345_v7 }
 0x4f3   :  { %v1689_v37 = vpop.f32.mrb[68].mxu0 }
 0x4f4   :  { %v1366_v8 = vadd.f32 %v1689_v37, %v1514_v61  ;;  %v1357_v9 = vpop.f32.mrb[69].mxu0 }
 0x4f5   :  { %v1358_v11 = vadd.f32 %v1514_v61, %v1357_v9  ;;  %v1690_v12 = vpop.f32.mrb[70].mxu0 }
 0x4f6   :  { %1410 = vst [vmem:[#allocation13 + $0x30] sm:$0xff] %v1366_v8  ;;  %v1369_v13 = vadd.f32 %v1690_v12, %v1514_v61  ;;  %v1360_v14 = vpop.f32.mrb[71].mxu0 }
 0x4f7   :  { %1408 = vst [vmem:[#allocation13 + $0x20] sm:$0xff] %v1358_v11  ;;  %v1361_v15 = vadd.f32 %v1514_v61, %v1360_v14 }
 0x4f8   :  { %1411 = vst [vmem:[#allocation13 + $0x38] sm:$0xff] %v1369_v13 }
 0x4f9   :  { %1409 = vst [vmem:[#allocation13 + $0x28] sm:$0xff] %v1361_v15 }
 0x503   :  { %v1693_v16 = vpop.f32.mrb[64].mxu1 }
 0x504   :  { %v1382_v17 = vadd.f32 %v1693_v16, %v1514_v61  ;;  %v1373_v18 = vpop.f32.mrb[65].mxu1 }
 0x505   :  { %v1374_v19 = vadd.f32 %v1514_v61, %v1373_v18  ;;  %v1694_v20 = vpop.f32.mrb[66].mxu1 }
 0x506   :  { %1414 = vst [vmem:[#allocation13 + $0x50] sm:$0xff] %v1382_v17  ;;  %v1385_v21 = vadd.f32 %v1694_v20, %v1514_v61  ;;  %v1376_v22 = vpop.f32.mrb[67].mxu1 }
 0x507   :  { %1412 = vst [vmem:[#allocation13 + $0x40] sm:$0xff] %v1374_v19  ;;  %v1377_v23 = vadd.f32 %v1514_v61, %v1376_v22 }
 0x508   :  { %1415 = vst [vmem:[#allocation13 + $0x58] sm:$0xff] %v1385_v21 }
 0x509   :  { %1413 = vst [vmem:[#allocation13 + $0x48] sm:$0xff] %v1377_v23 }
 0x513   :  { %v1697_v24 = vpop.f32.mrb[68].mxu1 }
 0x514   :  { %v1398_v25 = vadd.f32 %v1697_v24, %v1514_v61  ;;  %v1389_v26 = vpop.f32.mrb[69].mxu1 }
 0x515   :  { %v1390_v27 = vadd.f32 %v1514_v61, %v1389_v26  ;;  %v1698_v28 = vpop.f32.mrb[70].mxu1 }
 0x516   :  { %1418 = vst [vmem:[#allocation13 + $0x70] sm:$0xff] %v1398_v25  ;;  %v1401_v29 = vadd.f32 %v1698_v28, %v1514_v61  ;;  %v1392_v30 = vpop.f32.mrb[71].mxu1 }
 0x517   :  { %1416 = vst [vmem:[#allocation13 + $0x60] sm:$0xff] %v1390_v27  ;;  %v1393_v31 = vadd.f32 %v1514_v61, %v1392_v30 }
 0x518   :  { %1419 = vst [vmem:[#allocation13 + $0x78] sm:$0xff] %v1401_v29 }
 0x519   :  { %1417 = vst [vmem:[#allocation13 + $0x68] sm:$0xff] %v1393_v31 }
 0x51a   :  { %1966 = shalt.err (!%p1963_p10)
}
 0x51b   :  { %s1967_s22 = scalar_lea.hbm %s2326_s11, 2048 }
 0x51c   :  { %p1968_p11 = scmp.ne.s32.totalorder %s2326_s11, %s1967_s22  ;;  %p1971_p12 = scmp.lt.u32.totalorder %s1967_s22, %s2326_s11 }
 0x51e   :  { %p1973_p13 = pnand %p1971_p12, %p1968_p11 }
 0x520   :  { %1976 = shalt.err (!%p1973_p13)
}
 0x521   :  { %1431 = dma.vmem_to_hbm [thread:$0]  %s1426_s23, 2048, %s2326_s11, [#allocation4], %s1988_s27, %s1988_s27, %s1989_s28  }
 0x522   :  { %1985 = dma.done.wait [#allocation4], 2048  }
 0x523   :  { %1986 = vsyncadd [#allocation4], 4294965248 }
 0x524   :  { %1435 = vsyncpa [#allocation3], 1 }
 0x525   :  { %1436 = vsyncpa [#allocation6], 1 }
 0x526   :  { %1437 = vsyncpa [#allocation9], 1 }
 0x527   :  { %1438 = vsyncpa [#allocation12], 1 }
 0x528   :  { %1439 = vsyncpa [#allocation4], 1 }

</bundles_post_ra>
